<compile_context>
chip_gen: v5e
topology: v5e:2x2
jax: 0.10.0
libtpu: 0.0.40
codegen_flags: <defaults>
</compile_context>

<pallas_src>
import math

import jax
import jax.numpy as jnp
from jax.experimental import pallas as pl
from jax.experimental.pallas import tpu as pltpu

CFG = dict(vocab_size=128, context_length=16, emb_dim=64, n_heads_q=4,
           n_heads_kv=None, n_blocks=2, ff_hidden_size=128, batch_size=2)
EPS = 1e-6
F32 = jnp.float32
BF16 = jnp.bfloat16


def _small_layout(E, F):
    """128-aligned lane offsets for the small per-layer tensors packed into one (1, P) array."""
    segs = [('g1', E), ('g2', E), ('b1', F), ('bwv', 2 * F), ('bd', F), ('b2', E)]
    offs, o = {}, 0
    for name, w in segs:
        offs[name] = o
        o += ((w + 127) // 128) * 128
    return offs, o


def _rmsnorm(x, gamma):
    # reference RMSNorm: rms = sqrt(eps + mean(x**2)) over ALL elements; y = x / rms * gamma
    n = float(x.shape[0] * x.shape[1])
    ssq = jnp.sum(jnp.sum(x * x, axis=1, keepdims=True), axis=0, keepdims=True)   # (1,1)
    inv = jax.lax.rsqrt(EPS + ssq * (1.0 / n))                                     # EUP rsqrt
    return x * inv * gamma


# ---------------------------------------------------------------------------
# Kernel (one grid step == one transformer block; final norm + LM head on last step)
# ---------------------------------------------------------------------------
def _transformer_kernel(
    # scalar prefetch
    sp_ref,
    # inputs
    x_ref, rope_ref, meh_ref, mhe_ref, kv_ref,
    wqkv_ref, wo_ref, w1_ref, wwv_ref, wd_ref, w2_ref, sc_ref,
    gf_ref, wlm_ref, blm_ref,
    # outputs
    logits_ref, kvrow_ref,
    # scratch
    h_scr,
):
    layer = pl.program_id(0)
    pos = sp_ref[0]                                   # current decode position (int32, SMEM)

    T, b, twoE = kv_ref.shape
    E = twoE // 2
    H = meh_ref.shape[1]
    D = E // H
    half = E // 2
    F = w1_ref.shape[1]
    scale = 1.0 / math.sqrt(D)
    offs, _ = _small_layout(E, F)

    @pl.when(layer == 0)
    def _():
        h_scr[...] = x_ref[...]                       # load the token embedding once

    x = h_scr[...]                                    # (b, E) residual stream (f32, VMEM)

    # ---- RMSNorm 1 ----
    g1 = sc_ref[:, offs['g1']:offs['g1'] + E]
    h1 = _rmsnorm(x, g1)

    # ---- fused QKV projection (bf16 weights, f32 accumulation). Q/K columns are permuted so
    #      that the RoPE pair partners live in two contiguous halves (no lane swizzle needed).
    qkv = jnp.dot(h1.astype(BF16), wqkv_ref[...], preferred_element_type=F32)       # (b, 3E)
    q_e, q_o = qkv[:, :half], qkv[:, half:E]
    k_e, k_o = qkv[:, E:E + half], qkv[:, E + half:2 * E]
    xv = qkv[:, 2 * E:]

    # ---- RoPE on the VPU (no MXU): out_even = e*cos - o*sin ; out_odd = e*sin + o*cos ----
    cos = rope_ref[:, :half]                          # (1, E/2), row `pos` fetched by BlockSpec
    sin = rope_ref[:, half:]
    q_e2 = q_e * cos - q_o * sin
    q_o2 = q_e * sin + q_o * cos
    k_e2 = k_e * cos - k_o * sin
    k_o2 = k_e * sin + k_o * cos
    xq_p = jnp.concatenate([q_e2, q_o2], axis=-1)                          # (b, E)  permuted
    new_row = jnp.concatenate([k_e2, k_o2, xv], axis=-1).astype(BF16)      # (b, 2E) [K|V] row

    # ---- KV cache: O(1) row writeback (pos-indexed, aliased output block) + in-VMEM splice ----
    kvrow_ref[...] = new_row[None]
    t_iota = jax.lax.broadcasted_iota(jnp.int32, (T, 1, 1), 0)
    kv_att = jnp.where(t_iota == pos, new_row[None], kv_ref[...])          # (T, b, 2E) bf16
    k_all = kv_att[:, :, :E]
    v_all = kv_att[:, :, E:].astype(F32)

    # ---- attention: flattened MXU matmuls via 0/1 head-mapping matrices ----
    kq = (k_all.astype(F32) * xq_p[None]).astype(BF16)                     # (T, b, E)
    scores = jnp.einsum('tbe,eh->tbh', kq, meh_ref[...],
                        preferred_element_type=F32) * scale                # (T, b, H)
    scores = jnp.where(t_iota <= pos, scores, jnp.float32(-1e30))
    m = jnp.max(scores, axis=0, keepdims=True)
    e = jnp.exp(scores - m)
    denom = jnp.sum(e, axis=0, keepdims=True)
    p = e * pl.reciprocal(denom, approx=True)                              # softmax over keys
    p_exp = jnp.einsum('tbh,he->tbe', p.astype(BF16), mhe_ref[...],
                       preferred_element_type=F32)                         # p[t,b,head(e)]
    attn = jnp.sum(p_exp * v_all, axis=0)                                  # (b, E)
    attn = jnp.dot(attn.astype(BF16), wo_ref[...], preferred_element_type=F32)

    y1 = x + attn                                                          # residual 1

    # ---- RMSNorm 2 + FeedForward (lyr1 -> SwiGLU -> lyr2), small tensors from packed const ----
    g2 = sc_ref[:, offs['g2']:offs['g2'] + E]
    b1 = sc_ref[:, offs['b1']:offs['b1'] + F]
    bwv = sc_ref[:, offs['bwv']:offs['bwv'] + 2 * F]
    bd = sc_ref[:, offs['bd']:offs['bd'] + F]
    b2 = sc_ref[:, offs['b2']:offs['b2'] + E]

    h2 = _rmsnorm(y1, g2)
    a = jnp.dot(h2.astype(BF16), w1_ref[...], preferred_element_type=F32) + b1
    wv_ = jnp.dot(a.astype(BF16), wwv_ref[...], preferred_element_type=F32) + bwv
    wx, vx = wv_[:, :F], wv_[:, F:]
    gate = vx * jax.nn.sigmoid(vx)                                         # SwiGLU
    dpj = jnp.dot((wx * gate).astype(BF16), wd_ref[...], preferred_element_type=F32) + bd
    ff = jnp.dot(dpj.astype(BF16), w2_ref[...], preferred_element_type=F32) + b2

    y2 = y1 + ff                                                           # residual 2
    h_scr[...] = y2

    # ---- final RMSNorm + LM head folded into the last grid step ----
    @pl.when(layer == pl.num_programs(0) - 1)
    def _():
        hn = _rmsnorm(y2, gf_ref[...])
        logits_ref[...] = (jnp.dot(hn.astype(BF16), wlm_ref[...],
                                   preferred_element_type=F32) + blm_ref[...])


# ---------------------------------------------------------------------------
# pallas_call wrapper (single fused call over the layer grid)
# ---------------------------------------------------------------------------
def make_decode_fn(cfg):
    E, F, V = cfg['emb_dim'], cfg['ff_hidden_size'], cfg['vocab_size']
    NB, H = cfg['n_blocks'], cfg['n_heads_q']
    T = cfg['context_length']
    b = cfg['batch_size']
    _, P = _small_layout(E, F)

    def rep(shape):                       # constant-index block (fetched once per call)
        nd = len(shape)
        return pl.BlockSpec(shape, lambda *_: (0,) * nd)

    def per_layer(trailing):              # per-layer stacked block, layer dim squeezed
        nd = len(trailing)
        return pl.BlockSpec((None,) + tuple(trailing), lambda l, *_: (l,) + (0,) * nd)

    in_specs = [
        rep((b, E)),                                              # token embedding
        pl.BlockSpec((None, 1, E), lambda l, sp: (sp[0], 0, 0)),  # RoPE [cos|sin] row at pos
        rep((E, H)),                                              # head map (permuted E) -> H
        rep((H, E)),                                              # head map H -> (orig E)
        per_layer((T, b, 2 * E)),                                 # fused K|V cache (bf16, aliased)
        per_layer((E, 3 * E)),                                    # wqkv (bf16, Q/K cols permuted)
        per_layer((E, E)),                                        # wo   (bf16)
        per_layer((E, F)),                                        # w1   (bf16)
        per_layer((F, 2 * F)),                                    # fused w|v (bf16)
        per_layer((F, F)),                                        # down_proj (bf16)
        per_layer((F, E)),                                        # w2   (bf16)
        per_layer((1, P)),                                        # packed g1,g2,b1,bwv,bd,b2
        rep((1, E)),                                              # final gamma
        rep((E, V)),                                              # lm head (bf16)
        rep((1, V)),                                              # lm bias
    ]
    out_specs = (
        rep((b, V)),                                                        # logits (128 lanes)
        pl.BlockSpec((None, 1, b, 2 * E), lambda l, sp: (l, sp[0], 0, 0)),  # new KV row only
    )
    out_shape = (
        jax.ShapeDtypeStruct((b, V), jnp.float32),
        jax.ShapeDtypeStruct((NB, T, b, 2 * E), jnp.bfloat16),
    )

    fused = pl.pallas_call(
        _transformer_kernel,
        grid_spec=pltpu.PrefetchScalarGridSpec(
            num_scalar_prefetch=1,                               # start_pos
            grid=(NB,),
            in_specs=in_specs,
            out_specs=out_specs,
            scratch_shapes=[pltpu.VMEM((b, E), jnp.float32)],    # residual stream, VMEM-resident
        ),
        out_shape=out_shape,
        # flat operand index incl. the scalar-prefetch arg: 5 == kv cache  ->  output 1
        input_output_aliases={5: 1},
        compiler_params=pltpu.CompilerParams(
            dimension_semantics=("arbitrary",)),                 # layers are sequential
    )

    def decode_step(params, consts, kv_cache, tokens, start_pos):
        # embedding gather stays in XLA glue (cheap, traced -> single compile for all positions)
        x = jnp.take(params['emb'], tokens[:, 0], axis=0)                            # (b, E)
        sp = jnp.full((1,), start_pos, dtype=jnp.int32)
        logits, kv_new = fused(
            sp, x, consts['rope'], consts['m_eh'], consts['m_he'], kv_cache,
            params['wqkv'], params['wo'], params['w1'], params['wwv'],
            params['wd'], params['w2'], params['small'],
            params['g_final'], params['w_lm'], params['b_lm'])
        return logits[:, None, :], kv_new                                            # (b, 1, V)

    return jax.jit(decode_step, donate_argnums=(2,))


# ---------------------------------------------------------------------------
# Params / constants
# ---------------------------------------------------------------------------
def init_params(key, cfg):
    E, F, V = cfg['emb_dim'], cfg['ff_hidden_size'], cfg['vocab_size']
    NB, H = cfg['n_blocks'], cfg['n_heads_q']
    D = E // H
    T = cfg['context_length']
    offs, P = _small_layout(E, F)

    def lin(k, *shape):
        return jax.random.normal(k, shape, jnp.float32) * 0.02

    keys = jax.random.split(key, 14)

    # Column permutation of Wq / Wk (stored as (in, out), i.e. already transposed vs nn.Linear):
    # permuted lane j < E/2 -> (head j // (D/2), even component 2i), lane E/2 + j -> odd 2i+1.
    j = jnp.arange(E // 2)
    h = j // (D // 2)
    i = j % (D // 2)
    perm = jnp.concatenate([h * D + 2 * i, h * D + 2 * i + 1])

    wq = lin(keys[1], NB, E, E)
    wk = lin(keys[2], NB, E, E)
    wv = lin(keys[3], NB, E, E)
    wqkv = jnp.concatenate([wq[:, :, perm], wk[:, :, perm], wv], axis=-1).astype(BF16)

    small = jnp.zeros((NB, 1, P), jnp.float32)
    small = small.at[:, :, offs['g1']:offs['g1'] + E].set(1.0)                      # RMSNorm-1 gamma
    small = small.at[:, :, offs['g2']:offs['g2'] + E].set(1.0)                      # RMSNorm-2 gamma
    small = small.at[:, :, offs['b1']:offs['b1'] + F].set(lin(keys[8], NB, 1, F))
    small = small.at[:, :, offs['bwv']:offs['bwv'] + 2 * F].set(lin(keys[9], NB, 1, 2 * F))
    small = small.at[:, :, offs['bd']:offs['bd'] + F].set(lin(keys[10], NB, 1, F))
    small = small.at[:, :, offs['b2']:offs['b2'] + E].set(lin(keys[11], NB, 1, E))

    params = dict(
        emb=lin(keys[0], V, E),
        wqkv=wqkv,
        wo=lin(keys[4], NB, E, E).astype(BF16),
        w1=lin(keys[5], NB, E, F).astype(BF16),
        wwv=lin(keys[6], NB, F, 2 * F).astype(BF16),
        wd=lin(keys[7], NB, F, F).astype(BF16),
        w2=lin(keys[12], NB, F, E).astype(BF16),
        small=small,
        g_final=jnp.ones((1, E), jnp.float32),
        w_lm=lin(keys[13], E, V).astype(BF16),
        b_lm=jnp.zeros((1, V), jnp.float32),
    )

    # RoPE table (reference: theta = 1 / base**(2*arange(0,D,2)/D)); row t = [cos | sin] tiled
    # over heads, laid out for the permuted even/odd-half Q/K layout.
    theta_num = jnp.arange(0, D, 2, dtype=jnp.float32)
    inv = 1.0 / (10000.0 ** (2.0 * theta_num / D))
    mpos = jnp.arange(T, dtype=jnp.float32)
    freqs = jnp.outer(mpos, inv)                                              # (T, D/2)
    rope = jnp.concatenate([jnp.tile(jnp.cos(freqs), (1, H)),
                            jnp.tile(jnp.sin(freqs), (1, H))], axis=-1)[:, None, :]  # (T, 1, E)

    head_perm = (jnp.arange(E) % (E // 2)) // (D // 2)        # head of a permuted Q/K lane
    m_eh = (head_perm[:, None] == jnp.arange(H)[None, :]).astype(BF16)       # (E, H)
    head_orig = jnp.arange(E) // D                            # head of an original V lane
    m_he = (jnp.arange(H)[:, None] == head_orig[None, :]).astype(BF16)       # (H, E)

    consts = dict(rope=rope, m_eh=m_eh, m_he=m_he)
    return params, consts


# ---------------------------------------------------------------------------
if __name__ == "__main__":
    key = jax.random.PRNGKey(0)
    pkey, tkey = jax.random.split(key)
    params, consts = init_params(pkey, CFG)
    decode = make_decode_fn(CFG)

    b, E, T, NB = CFG['batch_size'], CFG['emb_dim'], CFG['context_length'], CFG['n_blocks']
    kv_cache = jnp.zeros((NB, T, b, 2 * E), jnp.bfloat16)      # fused [K|V] cache, bf16
    tokens = jax.random.randint(tkey, (b, 1), 0, CFG['vocab_size'], dtype=jnp.int32)

    logits = None
    for pos in range(4):   # several decode steps, ONE compile (start_pos is a runtime scalar)
        logits, kv_cache = decode(params, consts, kv_cache, tokens, jnp.int32(pos))
    logits = jax.block_until_ready(logits)

    assert logits.shape == (b, 1, CFG['vocab_size'])
    assert bool(jnp.all(jnp.isfinite(logits)))
    print("KERNEL_OK")
</pallas_src>

<mosaic_0001>
module attributes {stable_mosaic.version = 11 : i64} {
  func.func @_transformer_kernel(%arg0: i32, %arg1: memref<1xi32, #tpu.memory_space<smem>>, %arg2: memref<2x64xf32, #tpu.memory_space<vmem>>, %arg3: memref<1x1x64xf32, #tpu.memory_space<vmem>>, %arg4: memref<64x4xbf16, #tpu.memory_space<vmem>>, %arg5: memref<4x64xbf16, #tpu.memory_space<vmem>>, %arg6: memref<1x16x2x128xbf16, #tpu.memory_space<vmem>>, %arg7: memref<1x64x192xbf16, #tpu.memory_space<vmem>>, %arg8: memref<1x64x64xbf16, #tpu.memory_space<vmem>>, %arg9: memref<1x64x128xbf16, #tpu.memory_space<vmem>>, %arg10: memref<1x128x256xbf16, #tpu.memory_space<vmem>>, %arg11: memref<1x128x128xbf16, #tpu.memory_space<vmem>>, %arg12: memref<1x128x64xbf16, #tpu.memory_space<vmem>>, %arg13: memref<1x1x896xf32, #tpu.memory_space<vmem>>, %arg14: memref<1x64xf32, #tpu.memory_space<vmem>>, %arg15: memref<64x128xbf16, #tpu.memory_space<vmem>>, %arg16: memref<1x128xf32, #tpu.memory_space<vmem>>, %arg17: memref<2x128xf32, #tpu.memory_space<vmem>>, %arg18: memref<1x1x2x128xbf16, #tpu.memory_space<vmem>>, %arg19: memref<2x64xf32, #tpu.memory_space<vmem>>) attributes {dimension_semantics = [#tpu.dimension_semantics<arbitrary>], iteration_bounds = array<i64: 2>, scalar_prefetch = 1 : i64, scratch_operands = 1 : i64, tpu.core_type = #tpu.core_type<tc>, window_params = [{pipeline_mode = #tpu.pipeline_mode<synchronous>, transform_indices = @transform_0, window_bounds = array<i64: 2, 64>}, {transform_indices = @transform_1, window_bounds = array<i64: 1, 1, 64>}, {pipeline_mode = #tpu.pipeline_mode<synchronous>, transform_indices = @transform_2, window_bounds = array<i64: 64, 4>}, {pipeline_mode = #tpu.pipeline_mode<synchronous>, transform_indices = @transform_3, window_bounds = array<i64: 4, 64>}, {transform_indices = @transform_4, window_bounds = array<i64: 1, 16, 2, 128>}, {transform_indices = @transform_5, window_bounds = array<i64: 1, 64, 192>}, {transform_indices = @transform_6, window_bounds = array<i64: 1, 64, 64>}, {transform_indices = @transform_7, window_bounds = array<i64: 1, 64, 128>}, {transform_indices = @transform_8, window_bounds = array<i64: 1, 128, 256>}, {transform_indices = @transform_9, window_bounds = array<i64: 1, 128, 128>}, {transform_indices = @transform_10, window_bounds = array<i64: 1, 128, 64>}, {transform_indices = @transform_11, window_bounds = array<i64: 1, 1, 896>}, {pipeline_mode = #tpu.pipeline_mode<synchronous>, transform_indices = @transform_12, window_bounds = array<i64: 1, 64>}, {pipeline_mode = #tpu.pipeline_mode<synchronous>, transform_indices = @transform_13, window_bounds = array<i64: 64, 128>}, {pipeline_mode = #tpu.pipeline_mode<synchronous>, transform_indices = @transform_14, window_bounds = array<i64: 1, 128>}, {pipeline_mode = #tpu.pipeline_mode<synchronous>, transform_indices = @transform_15, window_bounds = array<i64: 2, 128>}, {transform_indices = @transform_16, window_bounds = array<i64: 1, 1, 2, 128>}]} {
    %c0 = arith.constant 0 : index
    %0 = memref.load %arg1[%c0] : memref<1xi32, #tpu.memory_space<smem>>
    %c0_i32 = arith.constant 0 : i32
    %1 = arith.cmpi eq, %arg0, %c0_i32 : i32
    %2 = arith.extui %1 : i1 to i32
    %c0_i32_0 = arith.constant 0 : i32
    %3 = arith.cmpi ne, %2, %c0_i32_0 : i32
    scf.if %3 {
      %c0_75 = arith.constant 0 : index
      %c0_76 = arith.constant 0 : index
      %172 = vector.load %arg2[%c0_75, %c0_76] : memref<2x64xf32, #tpu.memory_space<vmem>>, vector<2x64xf32>
      %c0_77 = arith.constant 0 : index
      %c0_78 = arith.constant 0 : index
      %173 = vector.load %arg19[%c0_77, %c0_78] : memref<2x64xf32, #tpu.memory_space<vmem>>, vector<2x64xf32>
      tpu.vector_store %arg19[%c0_77, %c0_78], %172 {strides = array<i32>} : memref<2x64xf32, #tpu.memory_space<vmem>>, vector<2x64xf32>,
    } else {
    }
    %c0_1 = arith.constant 0 : index
    %c0_2 = arith.constant 0 : index
    %4 = vector.load %arg19[%c0_1, %c0_2] : memref<2x64xf32, #tpu.memory_space<vmem>>, vector<2x64xf32>
    %c0_3 = arith.constant 0 : index
    %c0_4 = arith.constant 0 : index
    %c0_5 = arith.constant 0 : index
    %5 = vector.load %arg13[%c0_3, %c0_4, %c0_5] : memref<1x1x896xf32, #tpu.memory_space<vmem>>, vector<1x1x64xf32>
    %6 = vector.shape_cast %5 : vector<1x1x64xf32> to vector<1x64xf32>
    %7 = arith.mulf %4, %4 : vector<2x64xf32>
    %cst = arith.constant dense<0.000000e+00> : vector<2xf32>
    %8 = vector.multi_reduction <add>, %7, %cst [1] : vector<2x64xf32> to vector<2xf32>
    %9 = vector.shape_cast %8 : vector<2xf32> to vector<2x1xf32>
    %cst_6 = arith.constant dense<0.000000e+00> : vector<1xf32>
    %10 = vector.multi_reduction <add>, %9, %cst_6 [0] : vector<2x1xf32> to vector<1xf32>
    %11 = vector.shape_cast %10 : vector<1xf32> to vector<1x1xf32>
    %cst_7 = arith.constant 7.812500e-03 : f32
    %12 = vector.broadcast %cst_7 : f32 to vector<1x1xf32>
    %13 = arith.mulf %11, %12 : vector<1x1xf32>
    %cst_8 = arith.constant 9.99999997E-7 : f32
    %14 = vector.broadcast %cst_8 : f32 to vector<1x1xf32>
    %15 = arith.addf %14, %13 : vector<1x1xf32>
    %16 = math.rsqrt %15 : vector<1x1xf32>
    %17 = vector.broadcast %16 : vector<1x1xf32> to vector<2x64xf32>
    %18 = arith.mulf %4, %17 : vector<2x64xf32>
    %19 = vector.broadcast %6 : vector<1x64xf32> to vector<2x64xf32>
    %20 = arith.mulf %18, %19 : vector<2x64xf32>
    %21 = arith.truncf %20 : vector<2x64xf32> to vector<2x64xbf16>
    %c0_9 = arith.constant 0 : index
    %c0_10 = arith.constant 0 : index
    %c0_11 = arith.constant 0 : index
    %22 = vector.load %arg7[%c0_9, %c0_10, %c0_11] : memref<1x64x192xbf16, #tpu.memory_space<vmem>>, vector<1x64x192xbf16>
    %23 = vector.shape_cast %22 : vector<1x64x192xbf16> to vector<64x192xbf16>
    %cst_12 = arith.constant dense<0.000000e+00> : vector<2x192xf32>
    %24 = tpu.matmul %21, %23, %cst_12 {dimension_numbers = #tpu.dot_dimension_numbers<[1], [0], [0], [1], [0, 0, 1, 1], [], []>} : vector<2x64xbf16>, vector<64x192xbf16>, vector<2x192xf32> -> vector<2x192xf32>
    %25 = vector.extract_strided_slice %24 {offsets = [0, 0], sizes = [2, 32], strides = [1, 1]} : vector<2x192xf32> to vector<2x32xf32>
    %26 = vector.extract_strided_slice %24 {offsets = [0, 32], sizes = [2, 32], strides = [1, 1]} : vector<2x192xf32> to vector<2x32xf32>
    %27 = vector.extract_strided_slice %24 {offsets = [0, 64], sizes = [2, 32], strides = [1, 1]} : vector<2x192xf32> to vector<2x32xf32>
    %28 = vector.extract_strided_slice %24 {offsets = [0, 96], sizes = [2, 32], strides = [1, 1]} : vector<2x192xf32> to vector<2x32xf32>
    %29 = vector.extract_strided_slice %24 {offsets = [0, 128], sizes = [2, 64], strides = [1, 1]} : vector<2x192xf32> to vector<2x64xf32>
    %c0_13 = arith.constant 0 : index
    %c0_14 = arith.constant 0 : index
    %c0_15 = arith.constant 0 : index
    %30 = vector.load %arg3[%c0_13, %c0_14, %c0_15] : memref<1x1x64xf32, #tpu.memory_space<vmem>>, vector<1x1x32xf32>
    %31 = vector.shape_cast %30 : vector<1x1x32xf32> to vector<1x32xf32>
    %c0_16 = arith.constant 0 : index
    %c0_17 = arith.constant 0 : index
    %c32 = arith.constant 32 : index
    %32 = vector.load %arg3[%c0_16, %c0_17, %c32] : memref<1x1x64xf32, #tpu.memory_space<vmem>>, vector<1x1x32xf32>
    %33 = vector.shape_cast %32 : vector<1x1x32xf32> to vector<1x32xf32>
    %34 = vector.broadcast %31 : vector<1x32xf32> to vector<2x32xf32>
    %35 = arith.mulf %25, %34 : vector<2x32xf32>
    %36 = vector.broadcast %33 : vector<1x32xf32> to vector<2x32xf32>
    %37 = arith.mulf %26, %36 : vector<2x32xf32>
    %38 = arith.subf %35, %37 : vector<2x32xf32>
    %39 = vector.broadcast %33 : vector<1x32xf32> to vector<2x32xf32>
    %40 = arith.mulf %25, %39 : vector<2x32xf32>
    %41 = vector.broadcast %31 : vector<1x32xf32> to vector<2x32xf32>
    %42 = arith.mulf %26, %41 : vector<2x32xf32>
    %43 = arith.addf %40, %42 : vector<2x32xf32>
    %44 = vector.broadcast %31 : vector<1x32xf32> to vector<2x32xf32>
    %45 = arith.mulf %27, %44 : vector<2x32xf32>
    %46 = vector.broadcast %33 : vector<1x32xf32> to vector<2x32xf32>
    %47 = arith.mulf %28, %46 : vector<2x32xf32>
    %48 = arith.subf %45, %47 : vector<2x32xf32>
    %49 = vector.broadcast %33 : vector<1x32xf32> to vector<2x32xf32>
    %50 = arith.mulf %27, %49 : vector<2x32xf32>
    %51 = vector.broadcast %31 : vector<1x32xf32> to vector<2x32xf32>
    %52 = arith.mulf %28, %51 : vector<2x32xf32>
    %53 = arith.addf %50, %52 : vector<2x32xf32>
    %54 = tpu.concatenate %38, %43 in 1 : vector<2x32xf32>, vector<2x32xf32> -> vector<2x64xf32>
    %55 = tpu.concatenate %48, %53, %29 in 1 : vector<2x32xf32>, vector<2x32xf32>, vector<2x64xf32> -> vector<2x128xf32>
    %56 = arith.truncf %55 : vector<2x128xf32> to vector<2x128xbf16>
    %57 = vector.shape_cast %56 : vector<2x128xbf16> to vector<1x2x128xbf16>
    %c0_18 = arith.constant 0 : index
    %c0_19 = arith.constant 0 : index
    %c0_20 = arith.constant 0 : index
    %c0_21 = arith.constant 0 : index
    %58 = vector.load %arg18[%c0_18, %c0_19, %c0_20, %c0_21] : memref<1x1x2x128xbf16, #tpu.memory_space<vmem>>, vector<1x1x2x128xbf16>
    %59 = vector.shape_cast %58 : vector<1x1x2x128xbf16> to vector<1x2x128xbf16>
    %60 = vector.shape_cast %57 : vector<1x2x128xbf16> to vector<1x1x2x128xbf16>
    tpu.vector_store %arg18[%c0_18, %c0_19, %c0_20, %c0_21], %60 {strides = array<i32>} : memref<1x1x2x128xbf16, #tpu.memory_space<vmem>>, vector<1x1x2x128xbf16>,
    %61 = tpu.iota {dimensions = array<i32: 0>} : vector<16x1x1xi32>
    %62 = vector.broadcast %0 : i32 to vector<16x1x1xi32>
    %63 = arith.cmpi eq, %61, %62 : vector<16x1x1xi32>
    %64 = vector.shape_cast %56 : vector<2x128xbf16> to vector<1x2x128xbf16>
    %c0_22 = arith.constant 0 : index
    %c0_23 = arith.constant 0 : index
    %c0_24 = arith.constant 0 : index
    %c0_25 = arith.constant 0 : index
    %65 = vector.load %arg6[%c0_22, %c0_23, %c0_24, %c0_25] : memref<1x16x2x128xbf16, #tpu.memory_space<vmem>>, vector<1x16x2x128xbf16>
    %66 = vector.shape_cast %65 : vector<1x16x2x128xbf16> to vector<16x2x128xbf16>
    %67 = vector.shape_cast %63 : vector<16x1x1xi1> to vector<16x1x1xi1>
    %68 = vector.broadcast %67 : vector<16x1x1xi1> to vector<16x2x128xi1>
    %69 = vector.shape_cast %64 : vector<1x2x128xbf16> to vector<1x2x128xbf16>
    %70 = vector.broadcast %69 : vector<1x2x128xbf16> to vector<16x2x128xbf16>
    %71 = arith.select %68, %70, %66 : vector<16x2x128xi1>, vector<16x2x128xbf16>
    %72 = vector.extract_strided_slice %71 {offsets = [0, 0, 0], sizes = [16, 2, 64], strides = [1, 1, 1]} : vector<16x2x128xbf16> to vector<16x2x64xbf16>
    %73 = vector.extract_strided_slice %71 {offsets = [0, 0, 64], sizes = [16, 2, 64], strides = [1, 1, 1]} : vector<16x2x128xbf16> to vector<16x2x64xbf16>
    %74 = arith.extf %73 : vector<16x2x64xbf16> to vector<16x2x64xf32>
    %75 = arith.extf %72 : vector<16x2x64xbf16> to vector<16x2x64xf32>
    %76 = vector.shape_cast %54 : vector<2x64xf32> to vector<1x2x64xf32>
    %77 = vector.broadcast %76 : vector<1x2x64xf32> to vector<16x2x64xf32>
    %78 = arith.mulf %75, %77 : vector<16x2x64xf32>
    %79 = arith.truncf %78 : vector<16x2x64xf32> to vector<16x2x64xbf16>
    %c0_26 = arith.constant 0 : index
    %c0_27 = arith.constant 0 : index
    %80 = vector.load %arg4[%c0_26, %c0_27] : memref<64x4xbf16, #tpu.memory_space<vmem>>, vector<64x4xbf16>
    "tpu.trace_start"() <{level = 10 : i32, message = "tbe,eh->tbh"}> : () -> ()
    %cst_28 = arith.constant dense<0.000000e+00> : vector<16x2x4xf32>
    %81 = tpu.matmul %79, %80, %cst_28 {dimension_numbers = #tpu.dot_dimension_numbers<[2], [0], [0, 1], [1], [0, 0, 0, 1, 1, 1], [], []>} : vector<16x2x64xbf16>, vector<64x4xbf16>, vector<16x2x4xf32> -> vector<16x2x4xf32>
    "tpu.trace_stop"() : () -> ()
    %cst_29 = arith.constant 2.500000e-01 : f32
    %82 = vector.broadcast %cst_29 : f32 to vector<16x2x4xf32>
    %83 = arith.mulf %81, %82 : vector<16x2x4xf32>
    %84 = vector.broadcast %0 : i32 to vector<16x1x1xi32>
    %85 = arith.cmpi sle, %61, %84 : vector<16x1x1xi32>
    %cst_30 = arith.constant -1.000000e+30 : f32
    %86 = vector.shape_cast %85 : vector<16x1x1xi1> to vector<16x1x1xi1>
    %87 = vector.broadcast %86 : vector<16x1x1xi1> to vector<16x2x4xi1>
    %88 = vector.broadcast %cst_30 : f32 to vector<16x2x4xf32>
    %89 = arith.select %87, %83, %88 : vector<16x2x4xi1>, vector<16x2x4xf32>
    %cst_31 = arith.constant dense<0xFF800000> : vector<2x4xf32>
    %90 = vector.multi_reduction <maximumf>, %89, %cst_31 [0] : vector<16x2x4xf32> to vector<2x4xf32>
    %91 = vector.shape_cast %90 : vector<2x4xf32> to vector<1x2x4xf32>
    %92 = vector.broadcast %91 : vector<1x2x4xf32> to vector<16x2x4xf32>
    %93 = arith.subf %89, %92 : vector<16x2x4xf32>
    %94 = math.exp %93 : vector<16x2x4xf32>
    %cst_32 = arith.constant dense<0.000000e+00> : vector<2x4xf32>
    %95 = vector.multi_reduction <add>, %94, %cst_32 [0] : vector<16x2x4xf32> to vector<2x4xf32>
    %96 = vector.shape_cast %95 : vector<2x4xf32> to vector<1x2x4xf32>
    %97 = tpu.reciprocal %96 {approx = true} : vector<1x2x4xf32> -> vector<1x2x4xf32>
    %98 = vector.broadcast %97 : vector<1x2x4xf32> to vector<16x2x4xf32>
    %99 = arith.mulf %94, %98 : vector<16x2x4xf32>
    %100 = arith.truncf %99 : vector<16x2x4xf32> to vector<16x2x4xbf16>
    %c0_33 = arith.constant 0 : index
    %c0_34 = arith.constant 0 : index
    %101 = vector.load %arg5[%c0_33, %c0_34] : memref<4x64xbf16, #tpu.memory_space<vmem>>, vector<4x64xbf16>
    "tpu.trace_start"() <{level = 10 : i32, message = "tbh,he->tbe"}> : () -> ()
    %cst_35 = arith.constant dense<0.000000e+00> : vector<16x2x64xf32>
    %102 = tpu.matmul %100, %101, %cst_35 {dimension_numbers = #tpu.dot_dimension_numbers<[2], [0], [0, 1], [1], [0, 0, 0, 1, 1, 1], [], []>} : vector<16x2x4xbf16>, vector<4x64xbf16>, vector<16x2x64xf32> -> vector<16x2x64xf32>
    "tpu.trace_stop"() : () -> ()
    %103 = arith.mulf %102, %74 : vector<16x2x64xf32>
    %cst_36 = arith.constant dense<0.000000e+00> : vector<2x64xf32>
    %104 = vector.multi_reduction <add>, %103, %cst_36 [0] : vector<16x2x64xf32> to vector<2x64xf32>
    %105 = arith.truncf %104 : vector<2x64xf32> to vector<2x64xbf16>
    %c0_37 = arith.constant 0 : index
    %c0_38 = arith.constant 0 : index
    %c0_39 = arith.constant 0 : index
    %106 = vector.load %arg8[%c0_37, %c0_38, %c0_39] : memref<1x64x64xbf16, #tpu.memory_space<vmem>>, vector<1x64x64xbf16>
    %107 = vector.shape_cast %106 : vector<1x64x64xbf16> to vector<64x64xbf16>
    %cst_40 = arith.constant dense<0.000000e+00> : vector<2x64xf32>
    %108 = tpu.matmul %105, %107, %cst_40 {dimension_numbers = #tpu.dot_dimension_numbers<[1], [0], [0], [1], [0, 0, 1, 1], [], []>} : vector<2x64xbf16>, vector<64x64xbf16>, vector<2x64xf32> -> vector<2x64xf32>
    %109 = arith.addf %4, %108 : vector<2x64xf32>
    %c0_41 = arith.constant 0 : index
    %c0_42 = arith.constant 0 : index
    %c128 = arith.constant 128 : index
    %110 = vector.load %arg13[%c0_41, %c0_42, %c128] : memref<1x1x896xf32, #tpu.memory_space<vmem>>, vector<1x1x64xf32>
    %111 = vector.shape_cast %110 : vector<1x1x64xf32> to vector<1x64xf32>
    %c0_43 = arith.constant 0 : index
    %c0_44 = arith.constant 0 : index
    %c256 = arith.constant 256 : index
    %112 = vector.load %arg13[%c0_43, %c0_44, %c256] : memref<1x1x896xf32, #tpu.memory_space<vmem>>, vector<1x1x128xf32>
    %113 = vector.shape_cast %112 : vector<1x1x128xf32> to vector<1x128xf32>
    %c0_45 = arith.constant 0 : index
    %c0_46 = arith.constant 0 : index
    %c384 = arith.constant 384 : index
    %114 = vector.load %arg13[%c0_45, %c0_46, %c384] : memref<1x1x896xf32, #tpu.memory_space<vmem>>, vector<1x1x256xf32>
    %115 = vector.shape_cast %114 : vector<1x1x256xf32> to vector<1x256xf32>
    %c0_47 = arith.constant 0 : index
    %c0_48 = arith.constant 0 : index
    %c640 = arith.constant 640 : index
    %116 = vector.load %arg13[%c0_47, %c0_48, %c640] : memref<1x1x896xf32, #tpu.memory_space<vmem>>, vector<1x1x128xf32>
    %117 = vector.shape_cast %116 : vector<1x1x128xf32> to vector<1x128xf32>
    %c0_49 = arith.constant 0 : index
    %c0_50 = arith.constant 0 : index
    %c768 = arith.constant 768 : index
    %118 = vector.load %arg13[%c0_49, %c0_50, %c768] : memref<1x1x896xf32, #tpu.memory_space<vmem>>, vector<1x1x64xf32>
    %119 = vector.shape_cast %118 : vector<1x1x64xf32> to vector<1x64xf32>
    %120 = arith.mulf %109, %109 : vector<2x64xf32>
    %cst_51 = arith.constant dense<0.000000e+00> : vector<2xf32>
    %121 = vector.multi_reduction <add>, %120, %cst_51 [1] : vector<2x64xf32> to vector<2xf32>
    %122 = vector.shape_cast %121 : vector<2xf32> to vector<2x1xf32>
    %cst_52 = arith.constant dense<0.000000e+00> : vector<1xf32>
    %123 = vector.multi_reduction <add>, %122, %cst_52 [0] : vector<2x1xf32> to vector<1xf32>
    %124 = vector.shape_cast %123 : vector<1xf32> to vector<1x1xf32>
    %cst_53 = arith.constant 7.812500e-03 : f32
    %125 = vector.broadcast %cst_53 : f32 to vector<1x1xf32>
    %126 = arith.mulf %124, %125 : vector<1x1xf32>
    %cst_54 = arith.constant 9.99999997E-7 : f32
    %127 = vector.broadcast %cst_54 : f32 to vector<1x1xf32>
    %128 = arith.addf %127, %126 : vector<1x1xf32>
    %129 = math.rsqrt %128 : vector<1x1xf32>
    %130 = vector.broadcast %129 : vector<1x1xf32> to vector<2x64xf32>
    %131 = arith.mulf %109, %130 : vector<2x64xf32>
    %132 = vector.broadcast %111 : vector<1x64xf32> to vector<2x64xf32>
    %133 = arith.mulf %131, %132 : vector<2x64xf32>
    %134 = arith.truncf %133 : vector<2x64xf32> to vector<2x64xbf16>
    %c0_55 = arith.constant 0 : index
    %c0_56 = arith.constant 0 : index
    %c0_57 = arith.constant 0 : index
    %135 = vector.load %arg9[%c0_55, %c0_56, %c0_57] : memref<1x64x128xbf16, #tpu.memory_space<vmem>>, vector<1x64x128xbf16>
    %136 = vector.shape_cast %135 : vector<1x64x128xbf16> to vector<64x128xbf16>
    %cst_58 = arith.constant dense<0.000000e+00> : vector<2x128xf32>
    %137 = tpu.matmul %134, %136, %cst_58 {dimension_numbers = #tpu.dot_dimension_numbers<[1], [0], [0], [1], [0, 0, 1, 1], [], []>} : vector<2x64xbf16>, vector<64x128xbf16>, vector<2x128xf32> -> vector<2x128xf32>
    %138 = vector.broadcast %113 : vector<1x128xf32> to vector<2x128xf32>
    %139 = arith.addf %137, %138 : vector<2x128xf32>
    %140 = arith.truncf %139 : vector<2x128xf32> to vector<2x128xbf16>
    %c0_59 = arith.constant 0 : index
    %c0_60 = arith.constant 0 : index
    %c0_61 = arith.constant 0 : index
    %141 = vector.load %arg10[%c0_59, %c0_60, %c0_61] : memref<1x128x256xbf16, #tpu.memory_space<vmem>>, vector<1x128x256xbf16>
    %142 = vector.shape_cast %141 : vector<1x128x256xbf16> to vector<128x256xbf16>
    %cst_62 = arith.constant dense<0.000000e+00> : vector<2x256xf32>
    %143 = tpu.matmul %140, %142, %cst_62 {dimension_numbers = #tpu.dot_dimension_numbers<[1], [0], [0], [1], [0, 0, 1, 1], [], []>} : vector<2x128xbf16>, vector<128x256xbf16>, vector<2x256xf32> -> vector<2x256xf32>
    %144 = vector.broadcast %115 : vector<1x256xf32> to vector<2x256xf32>
    %145 = arith.addf %143, %144 : vector<2x256xf32>
    %146 = vector.extract_strided_slice %145 {offsets = [0, 0], sizes = [2, 128], strides = [1, 1]} : vector<2x256xf32> to vector<2x128xf32>
    %147 = vector.extract_strided_slice %145 {offsets = [0, 128], sizes = [2, 128], strides = [1, 1]} : vector<2x256xf32> to vector<2x128xf32>
    %148 = arith.negf %147 : vector<2x128xf32>
    %149 = math.exp %148 : vector<2x128xf32>
    %cst_63 = arith.constant 1.000000e+00 : f32
    %150 = vector.broadcast %cst_63 : f32 to vector<2x128xf32>
    %151 = arith.addf %150, %149 : vector<2x128xf32>
    %152 = arith.divf %150, %151 : vector<2x128xf32>
    %153 = arith.mulf %147, %152 : vector<2x128xf32>
    %154 = arith.mulf %146, %153 : vector<2x128xf32>
    %155 = arith.truncf %154 : vector<2x128xf32> to vector<2x128xbf16>
    %c0_64 = arith.constant 0 : index
    %c0_65 = arith.constant 0 : index
    %c0_66 = arith.constant 0 : index
    %156 = vector.load %arg11[%c0_64, %c0_65, %c0_66] : memref<1x128x128xbf16, #tpu.memory_space<vmem>>, vector<1x128x128xbf16>
    %157 = vector.shape_cast %156 : vector<1x128x128xbf16> to vector<128x128xbf16>
    %cst_67 = arith.constant dense<0.000000e+00> : vector<2x128xf32>
    %158 = tpu.matmul %155, %157, %cst_67 {dimension_numbers = #tpu.dot_dimension_numbers<[1], [0], [0], [1], [0, 0, 1, 1], [], []>} : vector<2x128xbf16>, vector<128x128xbf16>, vector<2x128xf32> -> vector<2x128xf32>
    %159 = vector.broadcast %117 : vector<1x128xf32> to vector<2x128xf32>
    %160 = arith.addf %158, %159 : vector<2x128xf32>
    %161 = arith.truncf %160 : vector<2x128xf32> to vector<2x128xbf16>
    %c0_68 = arith.constant 0 : index
    %c0_69 = arith.constant 0 : index
    %c0_70 = arith.constant 0 : index
    %162 = vector.load %arg12[%c0_68, %c0_69, %c0_70] : memref<1x128x64xbf16, #tpu.memory_space<vmem>>, vector<1x128x64xbf16>
    %163 = vector.shape_cast %162 : vector<1x128x64xbf16> to vector<128x64xbf16>
    %cst_71 = arith.constant dense<0.000000e+00> : vector<2x64xf32>
    %164 = tpu.matmul %161, %163, %cst_71 {dimension_numbers = #tpu.dot_dimension_numbers<[1], [0], [0], [1], [0, 0, 1, 1], [], []>} : vector<2x128xbf16>, vector<128x64xbf16>, vector<2x64xf32> -> vector<2x64xf32>
    %165 = vector.broadcast %119 : vector<1x64xf32> to vector<2x64xf32>
    %166 = arith.addf %164, %165 : vector<2x64xf32>
    %167 = arith.addf %109, %166 : vector<2x64xf32>
    %c0_72 = arith.constant 0 : index
    %c0_73 = arith.constant 0 : index
    %168 = vector.load %arg19[%c0_72, %c0_73] : memref<2x64xf32, #tpu.memory_space<vmem>>, vector<2x64xf32>
    tpu.vector_store %arg19[%c0_72, %c0_73], %167 {strides = array<i32>} : memref<2x64xf32, #tpu.memory_space<vmem>>, vector<2x64xf32>,
    %c1_i32 = arith.constant 1 : i32
    %169 = arith.cmpi eq, %arg0, %c1_i32 : i32
    %170 = arith.extui %169 : i1 to i32
    %c0_i32_74 = arith.constant 0 : i32
    %171 = arith.cmpi ne, %170, %c0_i32_74 : i32
    scf.if %171 {
      %c0_75 = arith.constant 0 : index
      %c0_76 = arith.constant 0 : index
      %172 = vector.load %arg14[%c0_75, %c0_76] : memref<1x64xf32, #tpu.memory_space<vmem>>, vector<1x64xf32>
      %173 = arith.mulf %167, %167 : vector<2x64xf32>
      %cst_77 = arith.constant dense<0.000000e+00> : vector<2xf32>
      %174 = vector.multi_reduction <add>, %173, %cst_77 [1] : vector<2x64xf32> to vector<2xf32>
      %175 = vector.shape_cast %174 : vector<2xf32> to vector<2x1xf32>
      %cst_78 = arith.constant dense<0.000000e+00> : vector<1xf32>
      %176 = vector.multi_reduction <add>, %175, %cst_78 [0] : vector<2x1xf32> to vector<1xf32>
      %177 = vector.shape_cast %176 : vector<1xf32> to vector<1x1xf32>
      %cst_79 = arith.constant 7.812500e-03 : f32
      %178 = vector.broadcast %cst_79 : f32 to vector<1x1xf32>
      %179 = arith.mulf %177, %178 : vector<1x1xf32>
      %cst_80 = arith.constant 9.99999997E-7 : f32
      %180 = vector.broadcast %cst_80 : f32 to vector<1x1xf32>
      %181 = arith.addf %180, %179 : vector<1x1xf32>
      %182 = math.rsqrt %181 : vector<1x1xf32>
      %183 = vector.broadcast %182 : vector<1x1xf32> to vector<2x64xf32>
      %184 = arith.mulf %167, %183 : vector<2x64xf32>
      %185 = vector.broadcast %172 : vector<1x64xf32> to vector<2x64xf32>
      %186 = arith.mulf %184, %185 : vector<2x64xf32>
      %187 = arith.truncf %186 : vector<2x64xf32> to vector<2x64xbf16>
      %c0_81 = arith.constant 0 : index
      %c0_82 = arith.constant 0 : index
      %188 = vector.load %arg15[%c0_81, %c0_82] : memref<64x128xbf16, #tpu.memory_space<vmem>>, vector<64x128xbf16>
      %cst_83 = arith.constant dense<0.000000e+00> : vector<2x128xf32>
      %189 = tpu.matmul %187, %188, %cst_83 {dimension_numbers = #tpu.dot_dimension_numbers<[1], [0], [0], [1], [0, 0, 1, 1], [], []>} : vector<2x64xbf16>, vector<64x128xbf16>, vector<2x128xf32> -> vector<2x128xf32>
      %c0_84 = arith.constant 0 : index
      %c0_85 = arith.constant 0 : index
      %190 = vector.load %arg16[%c0_84, %c0_85] : memref<1x128xf32, #tpu.memory_space<vmem>>, vector<1x128xf32>
      %191 = vector.broadcast %190 : vector<1x128xf32> to vector<2x128xf32>
      %192 = arith.addf %189, %191 : vector<2x128xf32>
      %c0_86 = arith.constant 0 : index
      %c0_87 = arith.constant 0 : index
      %193 = vector.load %arg17[%c0_86, %c0_87] : memref<2x128xf32, #tpu.memory_space<vmem>>, vector<2x128xf32>
      tpu.vector_store %arg17[%c0_86, %c0_87], %192 {strides = array<i32>} : memref<2x128xf32, #tpu.memory_space<vmem>>, vector<2x128xf32>,
    } else {
    }
    return
  }
  func.func @transform_0(%arg0: i32, %arg1: memref<1xi32, #tpu.memory_space<smem>>) -> (i32, i32) {
    %c0_i32 = arith.constant 0 : i32
    %c0_i32_0 = arith.constant 0 : i32
    %c0_i32_1 = arith.constant 0 : i32
    return %c0_i32, %c0_i32_0 : i32, i32
  }
  func.func @transform_1(%arg0: i32, %arg1: memref<1xi32, #tpu.memory_space<smem>>) -> (i32, i32, i32) {
    %c0 = arith.constant 0 : index
    %0 = memref.load %arg1[%c0] : memref<1xi32, #tpu.memory_space<smem>>
    %c0_i32 = arith.constant 0 : i32
    %c0_i32_0 = arith.constant 0 : i32
    %c0_i32_1 = arith.constant 0 : i32
    return %0, %c0_i32, %c0_i32_0 : i32, i32, i32
  }
  func.func @transform_2(%arg0: i32, %arg1: memref<1xi32, #tpu.memory_space<smem>>) -> (i32, i32) {
    %c0_i32 = arith.constant 0 : i32
    %c0_i32_0 = arith.constant 0 : i32
    %c0_i32_1 = arith.constant 0 : i32
    return %c0_i32, %c0_i32_0 : i32, i32
  }
  func.func @transform_3(%arg0: i32, %arg1: memref<1xi32, #tpu.memory_space<smem>>) -> (i32, i32) {
    %c0_i32 = arith.constant 0 : i32
    %c0_i32_0 = arith.constant 0 : i32
    %c0_i32_1 = arith.constant 0 : i32
    return %c0_i32, %c0_i32_0 : i32, i32
  }
  func.func @transform_4(%arg0: i32, %arg1: memref<1xi32, #tpu.memory_space<smem>>) -> (i32, i32, i32, i32) {
    %c0_i32 = arith.constant 0 : i32
    %c0_i32_0 = arith.constant 0 : i32
    %c0_i32_1 = arith.constant 0 : i32
    %c0_i32_2 = arith.constant 0 : i32
    return %arg0, %c0_i32, %c0_i32_0, %c0_i32_1 : i32, i32, i32, i32
  }
  func.func @transform_5(%arg0: i32, %arg1: memref<1xi32, #tpu.memory_space<smem>>) -> (i32, i32, i32) {
    %c0_i32 = arith.constant 0 : i32
    %c0_i32_0 = arith.constant 0 : i32
    %c0_i32_1 = arith.constant 0 : i32
    return %arg0, %c0_i32, %c0_i32_0 : i32, i32, i32
  }
  func.func @transform_6(%arg0: i32, %arg1: memref<1xi32, #tpu.memory_space<smem>>) -> (i32, i32, i32) {
    %c0_i32 = arith.constant 0 : i32
    %c0_i32_0 = arith.constant 0 : i32
    %c0_i32_1 = arith.constant 0 : i32
    return %arg0, %c0_i32, %c0_i32_0 : i32, i32, i32
  }
  func.func @transform_7(%arg0: i32, %arg1: memref<1xi32, #tpu.memory_space<smem>>) -> (i32, i32, i32) {
    %c0_i32 = arith.constant 0 : i32
    %c0_i32_0 = arith.constant 0 : i32
    %c0_i32_1 = arith.constant 0 : i32
    return %arg0, %c0_i32, %c0_i32_0 : i32, i32, i32
  }
  func.func @transform_8(%arg0: i32, %arg1: memref<1xi32, #tpu.memory_space<smem>>) -> (i32, i32, i32) {
    %c0_i32 = arith.constant 0 : i32
    %c0_i32_0 = arith.constant 0 : i32
    %c0_i32_1 = arith.constant 0 : i32
    return %arg0, %c0_i32, %c0_i32_0 : i32, i32, i32
  }
  func.func @transform_9(%arg0: i32, %arg1: memref<1xi32, #tpu.memory_space<smem>>) -> (i32, i32, i32) {
    %c0_i32 = arith.constant 0 : i32
    %c0_i32_0 = arith.constant 0 : i32
    %c0_i32_1 = arith.constant 0 : i32
    return %arg0, %c0_i32, %c0_i32_0 : i32, i32, i32
  }
  func.func @transform_10(%arg0: i32, %arg1: memref<1xi32, #tpu.memory_space<smem>>) -> (i32, i32, i32) {
    %c0_i32 = arith.constant 0 : i32
    %c0_i32_0 = arith.constant 0 : i32
    %c0_i32_1 = arith.constant 0 : i32
    return %arg0, %c0_i32, %c0_i32_0 : i32, i32, i32
  }
  func.func @transform_11(%arg0: i32, %arg1: memref<1xi32, #tpu.memory_space<smem>>) -> (i32, i32, i32) {
    %c0_i32 = arith.constant 0 : i32
    %c0_i32_0 = arith.constant 0 : i32
    %c0_i32_1 = arith.constant 0 : i32
    return %arg0, %c0_i32, %c0_i32_0 : i32, i32, i32
  }
  func.func @transform_12(%arg0: i32, %arg1: memref<1xi32, #tpu.memory_space<smem>>) -> (i32, i32) {
    %c0_i32 = arith.constant 0 : i32
    %c0_i32_0 = arith.constant 0 : i32
    %c0_i32_1 = arith.constant 0 : i32
    return %c0_i32, %c0_i32_0 : i32, i32
  }
  func.func @transform_13(%arg0: i32, %arg1: memref<1xi32, #tpu.memory_space<smem>>) -> (i32, i32) {
    %c0_i32 = arith.constant 0 : i32
    %c0_i32_0 = arith.constant 0 : i32
    %c0_i32_1 = arith.constant 0 : i32
    return %c0_i32, %c0_i32_0 : i32, i32
  }
  func.func @transform_14(%arg0: i32, %arg1: memref<1xi32, #tpu.memory_space<smem>>) -> (i32, i32) {
    %c0_i32 = arith.constant 0 : i32
    %c0_i32_0 = arith.constant 0 : i32
    %c0_i32_1 = arith.constant 0 : i32
    return %c0_i32, %c0_i32_0 : i32, i32
  }
  func.func @transform_15(%arg0: i32, %arg1: memref<1xi32, #tpu.memory_space<smem>>) -> (i32, i32) {
    %c0_i32 = arith.constant 0 : i32
    %c0_i32_0 = arith.constant 0 : i32
    %c0_i32_1 = arith.constant 0 : i32
    return %c0_i32, %c0_i32_0 : i32, i32
  }
  func.func @transform_16(%arg0: i32, %arg1: memref<1xi32, #tpu.memory_space<smem>>) -> (i32, i32, i32, i32) {
    %c0 = arith.constant 0 : index
    %0 = memref.load %arg1[%c0] : memref<1xi32, #tpu.memory_space<smem>>
    %c0_i32 = arith.constant 0 : i32
    %c0_i32_0 = arith.constant 0 : i32
    %c0_i32_1 = arith.constant 0 : i32
    return %arg0, %0, %c0_i32, %c0_i32_0 : i32, i32, i32, i32
  }
}

</mosaic_0001>

<bundles_post_ra>
// kernel: decode_step.1
= control target key start
LH: loop header
LB: loop body
LE: loop exit
PB: predicated region body
PF: predicated region fallthrough
CT: control target
= control target key end

     0   :  { %s4024_s0 = inlined_call_operand.<no memory space> [shape: s32[1], index: 0, kind: input, shape index: {}]   ;;  %s4025_s1 = inlined_call_operand.vmem [shape: f32[2,64], index: 1, kind: input, shape index: {}]   ;;  %s4026_s2 = inlined_call_operand.hbm [shape: f32[16,1,64], index: 2, kind: input, shape index: {}]   ;;  %s4027_s3 = inlined_call_operand.vmem [shape: bf16[64,4], index: 3, kind: input, shape index: {}]   ;;  %s4028_s4 = inlined_call_operand.vmem [shape: bf16[4,64], index: 4, kind: input, shape index: {}]   ;;  %s4029_s5 = inlined_call_operand.vmem [shape: bf16[2,16,2,128], index: 5, kind: input, shape index: {}, may-alias: {5,17}]   ;;  %s4030_s6 = inlined_call_operand.hbm [shape: bf16[2,64,192], index: 6, kind: input, shape index: {}]   ;;  %s4031_s7 = inlined_call_operand.vmem [shape: bf16[2,64,64], index: 7, kind: input, shape index: {}]   ;;  %s4032_s8 = inlined_call_operand.hbm [shape: bf16[2,64,128], index: 8, kind: input, shape index: {}]   ;;  %s4033_s9 = inlined_call_operand.vmem [shape: bf16[2,128,256], index: 9, kind: input, shape index: {}]   ;;  %s4034_s10 = inlined_call_operand.hbm [shape: bf16[2,128,128], index: 10, kind: input, shape index: {}]   ;;  %s4035_s11 = inlined_call_operand.vmem [shape: bf16[2,128,64], index: 11, kind: input, shape index: {}]   ;;  %s4036_s12 = inlined_call_operand.hbm [shape: f32[2,1,896], index: 12, kind: input, shape index: {}]   ;;  %s4037_s13 = inlined_call_operand.vmem [shape: f32[1,64], index: 13, kind: input, shape index: {}]   ;;  %s4038_s14 = inlined_call_operand.vmem [shape: bf16[64,128], index: 14, kind: input, shape index: {}]   ;;  %s4039_s15 = inlined_call_operand.vmem [shape: f32[1,128], index: 15, kind: input, shape index: {}]   ;;  %s4040_s16 = inlined_call_operand.hbm [shape: f32[2,128], index: 16, kind: output, shape index: {0}]   ;;  %s4041_s17 = inlined_call_operand.vmem [shape: bf16[2,16,2,128], index: 17, kind: output, shape index: {1}, may-alias: {5,17}]  }
   0x1   :  { %4055 = sst [smem:[#allocation23_spill]] %s4024_s0 }
   0x2   :  { %4056 = sst [smem:[#allocation24_spill]] %s4025_s1 }
   0x3   :  { %4057 = sst [smem:[#allocation25_spill]] %s4026_s2 }
   0x4   :  { %4058 = sst [smem:[#allocation26_spill]] %s4027_s3 }
   0x5   :  { %4059 = sst [smem:[#allocation27_spill]] %s4028_s4 }
   0x6   :  { %4060 = sst [smem:[#allocation28_spill]] %s4030_s6 }
   0x7   :  { %4061 = sst [smem:[#allocation29_spill]] %s4033_s9 }
   0x8   :  { %4062 = sst [smem:[#allocation30_spill]] %s4034_s10 }
   0x9   :  { %4063 = sst [smem:[#allocation31_spill]] %s4035_s11 }
   0xa   :  { %4064 = sst [smem:[#allocation32_spill]] %s4037_s13 }
   0xb   :  { %4065 = sst [smem:[#allocation33_spill]] %s4038_s14 }
   0xc   :  { %4066 = sst [smem:[#allocation34_spill]] %s4039_s15 }
   0xd   :  { %4067 = sst [smem:[#allocation35_spill]] %s4040_s16 }
   0xe   :  { %4068 = sst [smem:[#allocation36_spill]] %s4041_s17 }
   0xf   :  { %s4069_s26 = sld [smem:[#allocation23_spill]] }
  0x15   :  { %23 = sst [smem:[#allocation4]] %s4069_s26 }
  0x16   :  { %24 = vsyncpa [#allocation6], 0 }
  0x17   :  { %25 = vsyncpa [#allocation9], 0 }
  0x18   :  { %27 = vsyncpa [#allocation9 + $0x1], 0 }
  0x19   :  { %28 = vsyncpa [#allocation12], 0 }
  0x1a   :  { %30 = vsyncpa [#allocation12 + $0x1], 0 }
  0x1b   :  { %31 = vsyncpa [#allocation7], 0  ;;  %s3276_s27 = smov 0   ;;  %s3278_s28 = smov 0  }
  0x1c   :  { %s3280_s29 = smov 0   ;;  %s3282_s0 = smov 0  }
  0x1d   :  { %s3284_s30 = smov 0   ;;  %s3286_s18 = smov 0  }
  0x1e LB: > { %4070 = sst [smem:[#allocation19_spill]] %s3160_s29  ;;  %s3307_s19 = sadd.s32 1, %s3172_s18   ;;  %s3172_s18 = sphi %s3286_s18, %s4120_s18   ;;  %s3168_s30 = sphi %s3284_s30, %s4019_s30   ;;  %s3164_s0 = sphi %s3282_s0, %s4123_s0   ;;  %s3160_s29 = sphi %s3280_s29, %s4122_s29   ;;  %s3156_s28 = sphi %s3278_s28, %s4125_s28   ;;  %s3152_s27 = sphi %s3276_s27, %s4124_s27  }
  0x1f   : > { %4071 = sst [smem:[#allocation20_spill]] %s3168_s30  ;;  %s161_s1 = sadd.s32 1, %s3160_s29 }
  0x20   : > { %4072 = sst [smem:[#allocation21_spill]] %s3307_s19  ;;  %s158_s20 = ssub.s32 %s3172_s18, %s3307_s19 }
  0x21   : > { %p168_p0 = scmp.ne.s32.totalorder %s3160_s29, %s3156_s28  ;;  %p159_p1 = scmp.eq.s32.totalorder %s158_s20, 0 }
  0x22   : > { %p169_p2 = scmp.eq.s32.totalorder %s3172_s18, 0  ;;  %p2762_p3 = scmp.lt.s32.totalorder %s3172_s18, 2 }
  0x23   : > { %s3317_s21 = scalar_select %p159_p1, %s3160_s29, %s161_s1  }
  0x24   : > { %p170_p4 = por %p169_p2, %p168_p0  ;;  %s4047_s22 = sand.u32 1, %s3172_s18  }
  0x25   : > { %4073 = sst [smem:[#allocation22_spill]] %s3317_s21  ;;  %s3321_s23 = sand.u32 1, %s3160_s29  }
  0x26   : > { %s4045_s24 = sshll.u32 %s3321_s23, 6  ;;  %s4046_s25 = sshll.u32 %s3172_s18, 6 }
  0x27   : > { %s4074_s6 = sld [smem:[#allocation28_spill]]  ;;  %s511_s20 = scalar_lea.vmem [#allocation8], %s4045_s24 }
  0x28   : > { %s519_s13 = sshll.u32 %s511_s20, 4  ;;  %p3334_p5 = pnand %p2762_p3, %p170_p4  ;;  %s520_s13 = int_to_ptr.vmem [resolvable:$true] %s519_s13 }
  0x29   : > { %s3340_s21 = scalar_lea.sflag [#allocation9], %s4047_s22 }
  0x2a   : > { %p2932_p7 = pneg %p3334_p5 }
  0x2d   : > { %s516_s19 = scalar_lea.hbm %s4074_s6, %s4046_s25  ;;  %s2935_s20 = scalar_lea.hbm %s4074_s6, 128 }
  0x2e   : > { %s517_s15 = sshll.u32 %s516_s19, 4  ;;  %s518_s15 = int_to_ptr.hbm [resolvable:$true] %s517_s15 }
  0x2f   : > { %s2928_s29 = sshra.s32 %s518_s15, 4  ;;  %s2929_s29 = int_to_ptr.hbm [resolvable:$true] %s2928_s29 }
  0x30   : > { %s2930_s16 = scalar_lea.hbm %s2929_s29, 64  ;;  %p2936_p10 = scmp.lt.s32.totalorder %s2929_s29, %s4074_s6 }
  0x31   : > { %p2931_p6 = scmp.ne.s32.totalorder %s2929_s29, %s2930_s16  ;;  %p2937_p11 = scmp.lt.s32.totalorder %s2935_s20, %s2930_s16 }
  0x33   : > { %p2933_p8 = pnand %p2932_p7, %p2931_p6  ;;  %p2938_p12 = por %p2937_p11, %p2936_p10 }
  0x35   : > { %p2934_p9 = pneg %p2933_p8 }
  0x37   : > { %p2939_p13 = pnand %p2938_p12, %p2934_p9 }
  0x39   : > { %2942 = shalt.err (!%p2939_p13)
}
  0x3a   : > { %s3174_s22 = smov 128   ;;  %s3175_s14 = smov 8  }
  0x3b   : > { %2752 = dma.hbm_to_vmem [thread:$0]  (!%p3334_p5), %s518_s15, 1024, %s520_s13, %s3340_s21, %s3174_s22, %s3174_s22, %s3175_s14  }
  0x3c   : > { %s4076_s19 = sshll.u32 %s3172_s18, 6  ;;  %s4077_s10 = sld [smem:[#allocation30_spill]] }
  0x3d   : > { %s4078_s29 = sshll.u32 %s3321_s23, 6  ;;  %s4079_s6 = sand.u32 1, %s3172_s18  }
  0x3e   : > { %s571_s25 = scalar_lea.vmem [#allocation11], %s4078_s29  ;;  %s3365_s3 = scalar_lea.sflag [#allocation12], %s4079_s6 }
  0x3f   : > { %s579_s16 = sshll.u32 %s571_s25, 4  ;;  %s580_s16 = int_to_ptr.vmem [resolvable:$true] %s579_s16 }
  0x42   : > { %s576_s24 = scalar_lea.hbm %s4077_s10, %s4076_s19  ;;  %s2965_s14 = scalar_lea.hbm %s4077_s10, 128 }
  0x43   : > { %s577_s20 = sshll.u32 %s576_s24, 4  ;;  %s578_s20 = int_to_ptr.hbm [resolvable:$true] %s577_s20 }
  0x44   : > { %s2958_s17 = sshra.s32 %s578_s20, 4  ;;  %s2959_s17 = int_to_ptr.hbm [resolvable:$true] %s2958_s17 }
  0x45   : > { %s2960_s11 = scalar_lea.hbm %s2959_s17, 64  ;;  %p2966_p3 = scmp.lt.s32.totalorder %s2959_s17, %s4077_s10 }
  0x46   : > { %p2961_p0 = scmp.ne.s32.totalorder %s2959_s17, %s2960_s11  ;;  %p2967_p4 = scmp.lt.s32.totalorder %s2965_s14, %s2960_s11 }
  0x48   : > { %p2963_p1 = pnand %p2961_p0, %p2932_p7  ;;  %p2968_p6 = por %p2967_p4, %p2966_p3 }
  0x4a   : > { %p2964_p2 = pneg %p2963_p1 }
  0x4c   : > { %p2969_p8 = pnand %p2968_p6, %p2964_p2 }
  0x4e   : > { %2972 = shalt.err (!%p2969_p8)
}
  0x4f   : > { %s4050_s6 = smov 64   ;;  %s4051_s19 = smov 4  }
  0x50   : > { %2758 = dma.hbm_to_vmem [thread:$0]  (!%p3334_p5), %s578_s20, 1024, %s580_s16, %s3365_s3, %s4050_s6, %s4050_s6, %s4051_s19  }
  0x51   : > { %s3383_s11 = sadd.s32 4294967295, %s3172_s18   ;;  %s62_s17 = sld [smem:[#allocation4]] }
  0x52   : > { %p80_p9 = scmp.ne.s32.totalorder %s3168_s30, %s3164_s0  ;;  %p81_p10 = scmp.eq.s32.totalorder %s3383_s11, 0 }
  0x53   : > { %p174_p11 = scmp.ne.s32.totalorder %s3156_s28, %s3152_s27  ;;  %p2403_p12 = scmp.ge.s32.totalorder %s3172_s18, 1 }
  0x54   : > { %p3391_p13 = por %p81_p10, %p80_p9  ;;  %p455_p0 = scmp.lt.s32.totalorder %s3172_s18, 3 }
  0x55   : > { %p3396_p1 = por %p174_p11, %p81_p10  ;;  %s3178_s0 = smov [#allocation5]  }
  0x56   : > { %p3400_p2 = pnand %p2403_p12, %p455_p0  ;;  %s474_s25 = sshll.u32 %s3178_s0, 4  ;;  %s475_s25 = int_to_ptr.vmem [resolvable:$true] %s474_s25 }
  0x57   : > { %s4083_s2 = sld [smem:[#allocation25_spill]]  ;;  %s2408_s14 = sshll.u32 %s3321_s23, 5 }
  0x58   : > { %p2745_p3 = pneg %p3400_p2  ;;  %s2667_s15 = sshll.u32 %s3172_s18, 5 }
  0x5a   : > { %p3411_p4 = pnand %p2745_p3, %p3391_p13 }
  0x5c   : > { %p2992_p8 = pneg %p3411_p4 }
  0x5d   : > { %s470_s20 = scalar_lea.hbm %s4083_s2, %s62_s17  ;;  %s2995_s27 = scalar_lea.hbm %s4083_s2, 16 }
  0x5e   : > { %s472_s13 = sshll.u32 %s470_s20, 4  ;;  %s473_s13 = int_to_ptr.hbm [resolvable:$true] %s472_s13 }
  0x5f   : > { %s2988_s22 = sshra.s32 %s473_s13, 4  ;;  %s2989_s22 = int_to_ptr.hbm [resolvable:$true] %s2988_s22 }
  0x60   : > { %s2990_s0 = scalar_lea.hbm %s2989_s22, 1  ;;  %p2996_p11 = scmp.lt.s32.totalorder %s2989_s22, %s4083_s2 }
  0x61   : > { %p2991_p6 = scmp.ne.s32.totalorder %s2989_s22, %s2990_s0  ;;  %p2997_p12 = scmp.lt.s32.totalorder %s2995_s27, %s2990_s0 }
  0x63   : > { %p2993_p9 = pnand %p2992_p8, %p2991_p6  ;;  %p2998_p0 = por %p2997_p12, %p2996_p11 }
  0x65   : > { %p2994_p10 = pneg %p2993_p9 }
  0x67   : > { %p2999_p3 = pnand %p2998_p0, %p2994_p10 }
  0x69   : > { %3002 = shalt.err (!%p2999_p3)
}
  0x6a   : > { %2748 = dma.hbm_to_vmem [thread:$0]  (!%p3411_p4), %s473_s13, 16, %s475_s25, [#allocation6]  }
  0x6b   : > { %s546_s30 = scalar_lea.hbm %s4032_s8, %s2667_s15  ;;  %s541_s9 = scalar_lea.vmem [#allocation10], %s2408_s14 }
  0x6c   : > { %s549_s17 = sshll.u32 %s541_s9, 4  ;;  %s547_s16 = sshll.u32 %s546_s30, 4  ;;  %s550_s17 = int_to_ptr.vmem [resolvable:$true] %s549_s17  ;;  %s548_s16 = int_to_ptr.hbm [resolvable:$true] %s547_s16 }
  0x6d   : > { %s2728_s6 = smul.u32 7, %s3321_s23  ;;  %s3018_s22 = sshra.s32 %s548_s16, 4  ;;  %s3019_s22 = int_to_ptr.hbm [resolvable:$true] %s3018_s22 }
  0x6e   : > { %s3020_s0 = scalar_lea.hbm %s3019_s22, 32  ;;  %s3025_s13 = scalar_lea.hbm %s4032_s8, 64 }
  0x6f   : > { %p3021_p6 = scmp.ne.s32.totalorder %s3019_s22, %s3020_s0  ;;  %p3026_p4 = scmp.lt.s32.totalorder %s3019_s22, %s4032_s8 }
  0x70   : > { %p3027_p10 = scmp.lt.s32.totalorder %s3025_s13, %s3020_s0 }
  0x71   : > { %p3023_p8 = pnand %p3021_p6, %p2932_p7 }
  0x72   : > { %p3028_p11 = por %p3027_p10, %p3026_p4 }
  0x73   : > { %p3024_p9 = pneg %p3023_p8 }
  0x75   : > { %p3029_p12 = pnand %p3028_p11, %p3024_p9 }
  0x77   : > { %3032 = shalt.err (!%p3029_p12)
}
  0x78   : > { %s4085_s9 = smov 4   ;;  %s4086_s30 = smov 64  }
  0x79   : > { %2755 = dma.hbm_to_vmem [thread:$0]  (!%p3334_p5), %s548_s16, 512, %s550_s17, %s3340_s21, %s4086_s30, %s4086_s30, %s4085_s9  }
  0x7a   : > { %s2729_s23 = smul.u32 7, %s3172_s18  ;;  %s601_s14 = scalar_lea.vmem [#allocation13], %s2728_s6 }
  0x7b   : > { %s609_s15 = sshll.u32 %s601_s14, 4  ;;  %s3055_s18 = scalar_lea.hbm %s4036_s12, 14  ;;  %s610_s15 = int_to_ptr.vmem [resolvable:$true] %s609_s15 }
  0x7c   : > { %s605_s22 = scalar_lea.hbm %s4036_s12, %s2729_s23 }
  0x7d   : > { %s607_s0 = sshll.u32 %s605_s22, 4  ;;  %s608_s0 = int_to_ptr.hbm [resolvable:$true] %s607_s0 }
  0x7e   : > { %s3048_s4 = sshra.s32 %s608_s0, 4  ;;  %s3049_s4 = int_to_ptr.hbm [resolvable:$true] %s3048_s4 }
  0x7f   : > { %s3050_s25 = scalar_lea.hbm %s3049_s4, 7  ;;  %p3056_p8 = scmp.lt.s32.totalorder %s3049_s4, %s4036_s12 }
  0x80   : > { %p3051_p0 = scmp.ne.s32.totalorder %s3049_s4, %s3050_s25  ;;  %p3057_p9 = scmp.lt.s32.totalorder %s3055_s18, %s3050_s25 }
  0x82   : > { %p3053_p3 = pnand %p3051_p0, %p2932_p7  ;;  %p3058_p4 = por %p3057_p9, %p3056_p8 }
  0x84   : > { %p3054_p6 = pneg %p3053_p3 }
  0x86   : > { %p3059_p10 = pnand %p3058_p4, %p3054_p6 }
  0x88   : > { %3062 = shalt.err (!%p3059_p10)
}
  0x89   : > { %2761 = dma.hbm_to_vmem [thread:$0]  (!%p3334_p5), %s608_s0, 112, %s610_s15, %s3365_s3  }
  0x8a   : > { %618 = sbr.rel (%p3400_p2) target bundleno = 2277 (0x8e5), region = 80 }
  0x8f   : > { %3135 = dma.done.wait (%p3391_p13), [#allocation6], 16  }
  0x90   : > { %3137 = vsyncadd (%p3391_p13), [#allocation6], 4294967280  ;;  %s625_s6 = sand.u32 1, %s3383_s11   ;;  %s627_s10 = sand.u32 1, %s3156_s28  }
  0x91   : > { %s2415_s19 = sshll.u32 %s627_s10, 6  ;;  %s626_s9 = scalar_lea.sflag [#allocation9], %s625_s6 }
  0x92   : > { %s3470_s30 = scalar_lea.vmem [#allocation8], %s2415_s19 }
  0x93   : > { %3139 = dma.done.wait (%p3396_p1), %s626_s9, 1536  }
  0x94   : > { %3141 = vsyncadd (%p3396_p1), %s626_s9, 4294965760  ;;  %s2416_s3 = sshll.u32 %s627_s10, 5  ;;  %s646_s26 = scalar_lea.sflag [#allocation12], %s625_s6 }
  0x95   : > { %s3476_s1 = scalar_lea.vmem [#allocation10], %s2416_s3  ;;  %s3478_s29 = scalar_lea.vmem [#allocation11], %s2415_s19 }
  0x96   : > { %3143 = dma.done.wait (%p3396_p1), %s646_s26, 1136  }
  0x97   : > { %3145 = vsyncadd (%p3396_p1), %s646_s26, 4294966160  ;;  %p747_p5 = scmp.lt.s32.totalorder %s3383_s11, 1  ;;  %s2730_s23 = smul.u32 7, %s627_s10 }
  0x98   : > { %s3485_s14 = sld [smem:[#allocation4]]  ;;  %p2426_p13 = scmp.ne.s32.totalorder %s3383_s11, 0 }
  0x99   : > { %s748_s15 = scalar_select %p747_p5, %s3383_s11, 1 }
  0x9a   : > { %s4087_s6 = sld [smem:[#allocation29_spill]] }
  0x9b   : > { %s2418_s27 = sshll.u32 %s748_s15, 4  ;;  %s2669_s20 = sshll.u32 %s748_s15, 5 }
  0x9c   : > { %s3491_s4 = scalar_lea.vmem %s4029_s5, %s2418_s27  ;;  %s3496_s24 = scalar_lea.vmem %s4031_s7, %s2669_s20 }
  0x9d   : > { %s2670_s21 = sshll.u32 %s748_s15, 7  ;;  %s2671_s18 = sshll.u32 %s748_s15, 6 }
  0x9e   : > { %s4088_s3 = sld [smem:[#allocation31_spill]]  ;;  %p769_p7 = scmp.lt.s32.totalorder %s3485_s14, 15 }
  0x9f   : > { %s4089_s13 = sld [smem:[#allocation36_spill]]  ;;  %s3516_s15 = scalar_lea.vmem [#allocation13], %s2730_s23 }
  0xa0   : > { %s3501_s10 = scalar_lea.vmem %s4087_s6, %s2670_s21  ;;  %s4090_s16 = sld [smem:[#allocation24_spill]] (!%p2426_p13) }
  0xa1   : > { %s770_s22 = scalar_select %p769_p7, %s3485_s14, 15 }
  0xa2   : > { %780 = sbr.rel (%p2426_p13) target bundleno = 169 (0xa9), region = 104 }
  0xa3   : > { %s3510_s0 = sadd.s32 %s2418_s27, %s770_s22 }
  0xa4   : > { %s3506_s26 = scalar_lea.vmem %s4088_s3, %s2671_s18 }
  0xa5   : > { %s773_s2 = scalar_lea.vmem %s4089_s13, %s3510_s0 }
  0xa7   : > { %v781_v0 = vld [vmem:[%s4090_s16] sm:$0x3]  ;;  %vm782_vm0 = vcmask 517120  }
  0xa8   : > { %783 = vst.msk [vmem:[#allocation2] sm:$0x3] %vm782_vm0, %v781_v0 }
  0xa9 PF: > { %vm4054_vm1 = vcmask 517120   ;;  %v2453_v4 = vld [vmem:[%s3470_s30 + $0x30] sm:$0xf]  ;;  %v2679_v5 = vld [vmem:[%s3470_s30 + $0x34] sm:$0xf0]  ;;  %vm791_vm2 = vcmask 1041408  }
  0xaa   : > { %v2678_v6 = vld [vmem:[%s3470_s30 + $0x34] sm:$0xf]  ;;  %v2454_v7 = vor.u32 %v2679_v5, %v2453_v4  ;;  %v2455_v8 = vld [vmem:[%s3470_s30 + $0x38] sm:$0xf0]  ;;  %v2445_v10 = vld [vmem:[%s3470_s30 + $0x20] sm:$0xf] }
  0xab   : > { %v2458_v9 = vor.u32 %v2678_v6, %v2455_v8  ;;  %v2677_v11 = vld [vmem:[%s3470_s30 + $0x24] sm:$0xf0]  ;;  %v2676_v12 = vld [vmem:[%s3470_s30 + $0x24] sm:$0xf]  ;;  %v2447_v14 = vld [vmem:[%s3470_s30 + $0x28] sm:$0xf0] }
  0xac   : > { %873 = vmatpush.bf16.msra.mxu0 %v2454_v7  ;;  %v2446_v13 = vor.u32 %v2677_v11, %v2445_v10  ;;  %v2437_v15 = vld [vmem:[%s3470_s30 + $0x10] sm:$0xf]  ;;  %v2675_v16 = vld [vmem:[%s3470_s30 + $0x14] sm:$0xf0]  ;;  %v2450_v17 = vor.u32 %v2676_v12, %v2447_v14  ;;  %v2674_v18 = vld [vmem:[%s3470_s30 + $0x14] sm:$0xf] }
  0xad   : > { %886 = vmatpush.bf16.msra.mxu1 %v2458_v9  ;;  %v2439_v19 = vld [vmem:[%s3470_s30 + $0x18] sm:$0xf0]  ;;  %v2438_v20 = vor.u32 %v2675_v16, %v2437_v15  ;;  %v2429_v23 = vld [vmem:[%s3470_s30] sm:$0xf]  ;;  %v2673_v24 = vld [vmem:[%s3470_s30 + $0x4] sm:$0xf0]  ;;  %v3581_v15 = vstv %s3485_s14 }
  0xae   : > { %v2442_v22 = vor.u32 %v2674_v18, %v2439_v19  ;;  %v2672_v26 = vld [vmem:[%s3470_s30 + $0x4] sm:$0xf]  ;;  %v2431_v27 = vld [vmem:[%s3470_s30 + $0x8] sm:$0xf0]  ;;  %v2430_v29 = vor.u32 %v2673_v24, %v2429_v23  ;;  %v2876_v35 = vld [vmem:[#allocation5] ss:$0 sm:$0xff] }
  0xaf   : > { %v3522_v1 = vld [vmem:[#allocation2] sm:$0x3]  ;;  %v2434_v31 = vor.u32 %v2672_v26, %v2431_v27  ;;  %s3179_s23 = smov 64   ;;  %s3180_s27 = smov 96   ;;  %v2875_v45 = vld [vmem:[%s3516_s15] ss:$0 sm:$0xff] }
  0xb0   : > { %v786_v2 = vmul.f32 %v3522_v1, %v3522_v1  ;;  %874 = vmatpush.bf16.msra.mxu0 %v2446_v13  ;;  %918 = vrot.lane.b32.xlu1 %v2876_v35, %s3179_s23  ;;  %s3181_s30 = smov 32   ;;  %vm4053_vm6 = vcmask 523264   ;;  %s4091_s19 = sld [smem:[#allocation26_spill]]  ;;  %vm936_vm7 = vcmask 261120   ;;  %vm957_vm8 = vcmp.eq.s32.totalorder %v3581_v15, 2 }
  0xb1   : > { %887 = vmatpush.bf16.msra.mxu1 %v2450_v17  ;;  %vm958_vm9 = vcmp.eq.s32.totalorder %v3581_v15, 3  ;;  %vm955_vm10 = vcmp.eq.s32.totalorder %v3581_v15, 0  ;;  %vm956_vm11 = vcmp.eq.s32.totalorder %v3581_v15, 1  ;;  %vm959_vm12 = vcmp.eq.s32.totalorder %v3581_v15, 4  ;;  %p2644_p1 = scmp.ne.s32.totalorder %s3383_s11, 1 }
  0xb2   : > { %v788_v3 = vsel %vm4054_vm1, %v786_v2, 0.0  ;;  %vm960_vm13 = vcmp.eq.s32.totalorder %v3581_v15, 5  ;;  %vm961_vm14 = vcmp.eq.s32.totalorder %v3581_v15, 6  ;;  %vm962_vm15 = vcmp.eq.s32.totalorder %v3581_v15, 7  ;;  %s4116_s6 = sld [smem:[#allocation32_spill]] (!%p2644_p1) }
  0xb3   : > { %789 = vadd.xlane.f32.xlu0 %v788_v3  ;;  %vm963_vm0 = vcmp.eq.s32.totalorder %v3581_v15, 8  ;;  %vm1238_vm1 = vcmp.ge.s32.totalorder %v3581_v15, 15  ;;  %s4118_s22 = sld [smem:[#allocation34_spill]] (!%p2644_p1) }
  0xb4   : > { %875 = vmatpush.bf16.msra.mxu0 %v2438_v20 }
  0xb5   : > { %888 = vmatpush.bf16.msra.mxu1 %v2442_v22 }
  0xb6   : > { %v2683_v4 = vld [vmem:[%s4091_s19 + $0x18] sm:$0xff]  ;;  %v2682_v5 = vld [vmem:[%s4091_s19 + $0x10] sm:$0xff]  ;;  %v2681_v6 = vld [vmem:[%s4091_s19 + $0x8] sm:$0xff] }
  0xb7   : > { %1164 = vmatpush.bf16.msra.mxu2 %v2683_v4  ;;  %v2680_v14 = vld [vmem:[%s4091_s19] sm:$0xff] }
  0xb8   : > { %876 = vmatpush.bf16.msra.mxu0 %v2430_v29  ;;  %909 = vrot.lane.b32.xlu1 %v2876_v35, %s3181_s30 }
  0xb9   : > { %889 = vmatpush.bf16.msra.mxu1 %v2434_v31 }
  0xbb   : > { %1165 = vmatpush.bf16.msra.mxu2 %v2682_v5 }
  0xbf   : > { %1166 = vmatpush.bf16.msra.mxu2 %v2681_v6 }
  0xc3   : > { %1167 = vmatpush.bf16.msra.mxu2 %v2680_v14 }
  0xc7   : > { %905 = vrot.lane.b32.xlu0 %v2876_v35, %s3180_s27 }
 0x122   : > { %v919_v50 = vpop.permute.xlu1 %918 }
 0x126   : > { %v790_v21 = vpop.xlane.xlu0 %789 }
 0x127   : > { %v792_v25 = vsel %vm791_vm2, %v790_v21, 0.0 }
 0x128   : > { %v793_v28 = vrot.slane %v792_v25, 4 }
 0x12a   : > { %v794_v30 = vadd.f32 %v793_v28, %v792_v25  ;;  %v910_v51 = vpop.permute.xlu1 %909 }
 0x12c   : > { %v795_v32 = vrot.slane %v794_v30, 2 }
 0x12e   : > { %v796_v33 = vadd.f32 %v795_v32, %v794_v30 }
 0x130   : > { %v797_v34 = vrot.slane %v796_v33, 1 }
 0x132   : > { %v798_v36 = vadd.f32 %v797_v34, %v796_v33 }
 0x134   : > { %v799_v37 = vmul.f32 0.0078125, %v798_v36 }
 0x136   : > { %v800_v38 = vadd.f32 1e-06, %v799_v37 }
 0x138   : > { %2881 = vrsqrt.f32 %v800_v38  ;;  %vm807_vm4 = vweird.f32 %v800_v38 }
 0x139   : > { %v906_v56 = vpop.permute.xlu0 %905 }
 0x13e   : > { %v2882_v39 = vpop.eup %2881 }
 0x13f   : > { %v802_v40 = vmul.f32 %v2882_v39, %v800_v38  ;;  %vm808_vm3 = vweird.f32 %v2882_v39 }
 0x140   : > { %vm809_vm5 = vmor %vm807_vm4, %vm808_vm3  ;;  %vm964_vm3 = vcmp.eq.s32.totalorder %v3581_v15, 9  ;;  %vm965_vm4 = vcmp.eq.s32.totalorder %v3581_v15, 10 }
 0x141   : > { %v803_v41 = vmul.f32 %v2882_v39, %v802_v40 }
 0x143   : > { %v804_v42 = vmul.f32 0.5, %v803_v41 }
 0x145   : > { %v805_v43 = vsub.f32 1.5, %v804_v42 }
 0x147   : > { %v806_v44 = vmul.f32 %v2882_v39, %v805_v43 }
 0x149   : > { %v810_v46 = vsel %vm809_vm5, %v2882_v39, %v806_v44  ;;  %vm966_vm5 = vcmp.eq.s32.totalorder %v3581_v15, 11 }
 0x14a   : > { %v811_v47 = vmul.f32 %v810_v46, %v3522_v1 }
 0x14c   : > { %v815_v48 = vmul.f32 %v2875_v45, %v811_v47 }
 0x14e   : > { %v816_v49 = vpack.c.bf16 %v815_v48, %v815_v48 }
 0x150   : > { %2459 = vmatmul.msk.bf16.vlgmr.msra.gmra.mxu0 %vm4053_vm6, %v816_v49  ;;  %2460 = vmatmul.msk.bf16.vlgmr.msra.gmra.mxu1 %vm4053_vm6, %v816_v49 }
 0x1cd   : > { %v878_v52 = vpop.f32.mrf.mxu0  ;;  %v891_v53 = vpop.f32.mrf.mxu1 }
 0x1ce   : > { %v921_v54 = vmul.f32 %v919_v50, %v878_v52  ;;  %v912_v55 = vmul.f32 %v910_v51, %v878_v52  ;;  %v908_v59 = vmul.f32 %v906_v56, %v878_v52  ;;  %v899_v1 = vmul.f32 %v2876_v35, %v878_v52 }
 0x1d0   : > { %923 = vrot.lane.b32.xlu2 %v921_v54, %s3180_s27  ;;  %914 = vrot.lane.b32.xlu1 %v912_v55, %s3180_s27 }
 0x1d5   : > { %v880_v57 = vpop.f32.mrf.mxu0  ;;  %v893_v58 = vpop.f32.mrf.mxu1 }
 0x1d8   : > { %928 = vrot.lane.b32.xlu2 %v908_v59, %s3180_s27 }
 0x22a   : > { %v924_v60 = vpop.permute.xlu2 %923 }
 0x22b   : > { %v926_v61 = vsub.f32 %v921_v54, %v924_v60 }
 0x22d   : > { %v2830_v62 = vpack.i.bf16 %v891_v53, %v926_v61 }
 0x22f   : > { %2831 = vrot.lane.b32.xlu2 %v2830_v62, %s3179_s23 }
 0x232   : > { %v929_v63 = vpop.permute.xlu2 %928 }
 0x233   : > { %v931_v0 = vadd.f32 %v929_v63, %v912_v55 }
 0x235   : > { %943 = vrot.lane.b32.xlu1 %v931_v0, %s3180_s27 }
 0x237   : > { %901 = vrot.lane.b32.xlu2 %v899_v1, %s3180_s27 }
 0x242   : > { %v915_v2 = vpop.permute.xlu1 %914 }
 0x243   : > { %v917_v3 = vadd.f32 %v915_v2, %v908_v59 }
 0x245   : > { %933 = vrot.lane.b32.xlu0 %v917_v3, %s3181_s30 }
 0x289   : > { %v2832_v7 = vpop.permute.xlu2 %2831 }
 0x28a   : > { %v2833_v8 = vunpack.i.l.bf16 %v2832_v7  ;;  %v2834_v9 = vunpack.i.h.bf16 %v2832_v7 }
 0x291   : > { %v902_v16 = vpop.permute.xlu2 %901 }
 0x292   : > { %v904_v20 = vsub.f32 %v899_v1, %v902_v16 }
 0x2a7   : > { %v944_v10 = vpop.permute.xlu1 %943 }
 0x2a8   : > { %v950_v11 = vsel %vm936_vm7, %v2833_v8, %v944_v10 }
 0x2a9   : > { %v951_v12 = vsel %vm4053_vm6, %v950_v11, %v2834_v9 }
 0x2aa   : > { %v3569_v13 = vpack.c.bf16 %v951_v12, %v951_v12 }
 0x2ac   : > { %953 = vst [vmem:[%s773_s2] sm:$0x1] %v3569_v13 }
 0x2b3   : > { %v973_v17 = vld [vmem:[%s3491_s4 + $0x2] sm:$0x1]  ;;  %v974_v18 = vld [vmem:[%s3491_s4 + $0x3] sm:$0x1]  ;;  %v971_v19 = vld [vmem:[%s3491_s4] sm:$0x1] }
 0x2b4   : > { %v1021_v21 = vsel %vm957_vm8, %v3569_v13, %v973_v17  ;;  %v1022_v22 = vsel %vm958_vm9, %v3569_v13, %v974_v18  ;;  %v972_v23 = vld [vmem:[%s3491_s4 + $0x1] sm:$0x1]  ;;  %v1019_v24 = vsel %vm955_vm10, %v3569_v13, %v971_v19  ;;  %v975_v25 = vld [vmem:[%s3491_s4 + $0x4] sm:$0x1]  ;;  %v976_v26 = vld [vmem:[%s3491_s4 + $0x5] sm:$0x1] }
 0x2b5   : > { %v1037_v27 = vunpack.c.l.bf16 %v1021_v21  ;;  %v1038_v28 = vunpack.c.l.bf16 %v1022_v22  ;;  %v1020_v29 = vsel %vm956_vm11, %v3569_v13, %v972_v23  ;;  %v1035_v30 = vunpack.c.l.bf16 %v1019_v24  ;;  %v979_v31 = vld [vmem:[%s3491_s4 + $0x8] sm:$0x1]  ;;  %v980_v32 = vld [vmem:[%s3491_s4 + $0x9] sm:$0x1]  ;;  %v977_v48 = vld [vmem:[%s3491_s4 + $0x6] sm:$0x1] }
 0x2b6   : > { %v1036_v33 = vunpack.c.l.bf16 %v1020_v29  ;;  %v1023_v34 = vsel %vm959_vm12, %v3569_v13, %v975_v25  ;;  %v1024_v35 = vsel %vm960_vm13, %v3569_v13, %v976_v26  ;;  %v3624_v40 = vsel %vm963_vm0, %v3569_v13, %v979_v31  ;;  %v978_v49 = vld [vmem:[%s3491_s4 + $0x7] sm:$0x1]  ;;  %v981_v58 = vld [vmem:[%s3491_s4 + $0xa] sm:$0x1]  ;;  %v982_v59 = vld [vmem:[%s3491_s4 + $0xb] sm:$0x1] }
 0x2b7   : > { %v934_v36 = vpop.permute.xlu0 %933  ;;  %v2840_v37 = vpack.i.bf16 %v1038_v28, %v1037_v27  ;;  %v1039_v38 = vunpack.c.l.bf16 %v1023_v34  ;;  %v1040_v39 = vunpack.c.l.bf16 %v1024_v35  ;;  %v3632_v43 = vsel %vm964_vm3, %v3569_v13, %v980_v32  ;;  %v985_v63 = vld [vmem:[%s3491_s4 + $0xe] sm:$0x1]  ;;  %v986_v3 = vld [vmem:[%s3491_s4 + $0xf] sm:$0x1]  ;;  %v983_v7 = vld [vmem:[%s3491_s4 + $0xc] sm:$0x1] }
 0x2b8   : > { %v3627_v41 = vsel %vm936_vm7, %v904_v20, %v934_v36  ;;  %v2835_v42 = vpack.i.bf16 %v1036_v33, %v1035_v30  ;;  %vm969_vm8 = vcmp.eq.s32.totalorder %v3581_v15, 14  ;;  %v1043_v53 = vunpack.c.l.bf16 %v3624_v40  ;;  %v984_v18 = vld [vmem:[%s3491_s4 + $0xd] sm:$0x1]  ;;  %s4093_s4 = sld [smem:[#allocation27_spill]] }
 0x2b9   : > { %2841 = vrot.lane.b32.xlu2 %v2840_v37, %s3179_s23  ;;  %v1053_v44 = vmul.f32 %v1037_v27, %v3627_v41  ;;  %v1054_v45 = vmul.f32 %v1038_v28, %v3627_v41  ;;  %v1051_v46 = vmul.f32 %v1035_v30, %v3627_v41  ;;  %v1052_v47 = vmul.f32 %v1036_v33, %v3627_v41 }
 0x2ba   : > { %2836 = vrot.lane.b32.xlu1 %v2835_v42, %s3179_s23  ;;  %v2845_v50 = vpack.i.bf16 %v1040_v39, %v1039_v38  ;;  %v1055_v51 = vmul.f32 %v1039_v38, %v3627_v41  ;;  %v1056_v52 = vmul.f32 %v1040_v39, %v3627_v41  ;;  %v1044_v57 = vunpack.c.l.bf16 %v3632_v43 }
 0x2bb   : > { %v1069_v54 = vpack.c.bf16 %v1053_v44, %v1053_v44  ;;  %v1070_v55 = vpack.c.bf16 %v1054_v45, %v1054_v45  ;;  %v1067_v56 = vpack.c.bf16 %v1051_v46, %v1051_v46  ;;  %v1068_v60 = vpack.c.bf16 %v1052_v47, %v1052_v47 }
 0x2bc   : > { %2846 = vrot.lane.b32.xlu0 %v2845_v50, %s3179_s23  ;;  %v1025_v61 = vsel %vm961_vm14, %v3569_v13, %v977_v48  ;;  %v1026_v62 = vsel %vm962_vm15, %v3569_v13, %v978_v49  ;;  %vm970_vm7 = vcmp.eq.s32.totalorder %v3581_v15, 15  ;;  %v1071_v0 = vpack.c.bf16 %v1055_v51, %v1055_v51 }
 0x2bd   : > { %1098 = vst [vmem:[#allocation1 + $0x2] ss:$9 sm:$0xff] %v1069_v54  ;;  %v1041_v1 = vunpack.c.l.bf16 %v1025_v61  ;;  %v1042_v2 = vunpack.c.l.bf16 %v1026_v62  ;;  %vm967_vm9 = vcmp.eq.s32.totalorder %v3581_v15, 12  ;;  %v1072_v4 = vpack.c.bf16 %v1056_v52, %v1056_v52 }
 0x2be   : > { %1101 = vst [vmem:[#allocation1 + $0x3] ss:$9 sm:$0xff] %v1070_v55  ;;  %v1029_v5 = vsel %vm965_vm4, %v3569_v13, %v981_v58  ;;  %v1030_v6 = vsel %vm966_vm5, %v3569_v13, %v982_v59  ;;  %vm968_vm10 = vcmp.eq.s32.totalorder %v3581_v15, 13  ;;  %v2855_v8 = vpack.i.bf16 %v1044_v57, %v1043_v53 }
 0x2bf   : > { %1092 = vst [vmem:[#allocation1] ss:$9 sm:$0xff] %v1067_v56  ;;  %v1057_v9 = vmul.f32 %v1041_v1, %v3627_v41  ;;  %v1058_v10 = vmul.f32 %v1042_v2, %v3627_v41  ;;  %v1033_v11 = vsel %vm969_vm8, %v3569_v13, %v985_v63  ;;  %v2850_v12 = vpack.i.bf16 %v1042_v2, %v1041_v1 }
 0x2c0   : > { %1095 = vst [vmem:[#allocation1 + $0x1] ss:$9 sm:$0xff] %v1068_v60  ;;  %v1045_v14 = vunpack.c.l.bf16 %v1029_v5  ;;  %v1046_v16 = vunpack.c.l.bf16 %v1030_v6  ;;  %v1034_v17 = vsel %vm970_vm7, %v3569_v13, %v986_v3  ;;  %v1031_v21 = vsel %vm967_vm9, %v3569_v13, %v983_v7 }
 0x2c1   : > { %1104 = vst [vmem:[#allocation1 + $0x4] ss:$9 sm:$0xff] %v1071_v0  ;;  %2856 = vrot.lane.b32.xlu2 %v2855_v8, %s3179_s23  ;;  %v1073_v19 = vpack.c.bf16 %v1057_v9, %v1057_v9  ;;  %v1074_v20 = vpack.c.bf16 %v1058_v10, %v1058_v10  ;;  %v1049_v23 = vunpack.c.l.bf16 %v1033_v11  ;;  %v1050_v24 = vunpack.c.l.bf16 %v1034_v17 }
 0x2c2   : > { %1107 = vst [vmem:[#allocation1 + $0x5] ss:$9 sm:$0xff] %v1072_v4  ;;  %2851 = vrot.lane.b32.xlu1 %v2850_v12, %s3179_s23  ;;  %v2860_v22 = vpack.i.bf16 %v1046_v16, %v1045_v14  ;;  %v1032_v25 = vsel %vm968_vm10, %v3569_v13, %v984_v18  ;;  %v1047_v26 = vunpack.c.l.bf16 %v1031_v21  ;;  %v1059_v28 = vmul.f32 %v1043_v53, %v3627_v41 }
 0x2c3   : > { %1110 = vst [vmem:[#allocation1 + $0x6] ss:$9 sm:$0xff] %v1073_v19  ;;  %v1048_v27 = vunpack.c.l.bf16 %v1032_v25  ;;  %v1060_v29 = vmul.f32 %v1044_v57, %v3627_v41  ;;  %v2870_v30 = vpack.i.bf16 %v1050_v24, %v1049_v23  ;;  %v1061_v31 = vmul.f32 %v1045_v14, %v3627_v41 }
 0x2c4   : > { %1113 = vst [vmem:[#allocation1 + $0x7] ss:$9 sm:$0xff] %v1074_v20  ;;  %2861 = vrot.lane.b32.xlu0 %v2860_v22, %s3179_s23  ;;  %v1062_v33 = vmul.f32 %v1046_v16, %v3627_v41  ;;  %v1075_v34 = vpack.c.bf16 %v1059_v28, %v1059_v28  ;;  %v1065_v13 = vmul.f32 %v1049_v23, %v3627_v41  ;;  %vm1223_vm11 = vcmp.ge.s32.totalorder %v3581_v15, 0 }
 0x2c5   : > { %v2865_v32 = vpack.i.bf16 %v1048_v27, %v1047_v26  ;;  %v1076_v35 = vpack.c.bf16 %v1060_v29, %v1060_v29  ;;  %v1066_v37 = vmul.f32 %v1050_v24, %v3627_v41  ;;  %v1077_v38 = vpack.c.bf16 %v1061_v31, %v1061_v31 }
 0x2c6   : > { %v1063_v39 = vmul.f32 %v1047_v26, %v3627_v41  ;;  %v1078_v40 = vpack.c.bf16 %v1062_v33, %v1062_v33  ;;  %v1064_v42 = vmul.f32 %v1048_v27, %v3627_v41  ;;  %v1081_v43 = vpack.c.bf16 %v1065_v13, %v1065_v13 }
 0x2c7   : > { %v1082_v44 = vpack.c.bf16 %v1066_v37, %v1066_v37  ;;  %vm1224_vm12 = vcmp.ge.s32.totalorder %v3581_v15, 1  ;;  %vm1225_vm13 = vcmp.ge.s32.totalorder %v3581_v15, 2  ;;  %vm1226_vm14 = vcmp.ge.s32.totalorder %v3581_v15, 3 }
 0x2c8   : > { %v1079_v45 = vpack.c.bf16 %v1063_v39, %v1063_v39  ;;  %v1080_v46 = vpack.c.bf16 %v1064_v42, %v1064_v42  ;;  %vm1287_vm15 = vcmask 25600   ;;  %vm1227_vm0 = vcmp.ge.s32.totalorder %v3581_v15, 4 }
 0x2c9   : > { %2871 = vrot.lane.b32.xlu2 %v2870_v30, %s3179_s23  ;;  %vm1228_vm3 = vcmp.ge.s32.totalorder %v3581_v15, 5  ;;  %vm1229_vm4 = vcmp.ge.s32.totalorder %v3581_v15, 6  ;;  %vm1230_vm5 = vcmp.ge.s32.totalorder %v3581_v15, 7  ;;  %vm1231_vm8 = vcmp.ge.s32.totalorder %v3581_v15, 8 }
 0x2ca   : > { %2866 = vrot.lane.b32.xlu1 %v2865_v32, %s3179_s23  ;;  %vm1232_vm7 = vcmp.ge.s32.totalorder %v3581_v15, 9  ;;  %vm1233_vm9 = vcmp.ge.s32.totalorder %v3581_v15, 10  ;;  %vm1234_vm10 = vcmp.ge.s32.totalorder %v3581_v15, 11 }
 0x2cb   : > { %v1114_v36 = vld [vmem:[#allocation1] sm:$0xff] }
 0x2cc   : > { %1116 = vst [vmem:[#allocation1] ss:$9 sm:$0xff] %v1075_v34  ;;  %2477 = vmatmul.msk.bf16.vlgmr.msra.gmra.mxu2 %vm4053_vm6, %v1114_v36 }
 0x2cd   : > { %1118 = vst [vmem:[#allocation1 + $0x1] ss:$9 sm:$0xff] %v1076_v35 }
 0x2ce   : > { %1120 = vst [vmem:[#allocation1 + $0x2] ss:$9 sm:$0xff] %v1077_v38 }
 0x2cf   : > { %1122 = vst [vmem:[#allocation1 + $0x3] ss:$9 sm:$0xff] %v1078_v40 }
 0x2d0   : > { %1128 = vst [vmem:[#allocation1 + $0x6] ss:$9 sm:$0xff] %v1081_v43 }
 0x2d1   : > { %1130 = vst [vmem:[#allocation1 + $0x7] ss:$9 sm:$0xff] %v1082_v44 }
 0x2d2   : > { %1124 = vst [vmem:[#allocation1 + $0x4] ss:$9 sm:$0xff] %v1079_v45 }
 0x2d3   : > { %1126 = vst [vmem:[#allocation1 + $0x5] ss:$9 sm:$0xff] %v1080_v46 }
 0x2da   : > { %v1131_v47 = vld [vmem:[#allocation1] sm:$0xff] }
 0x2dc   : > { %2478 = vmatmul.msk.bf16.gmra.mxu2 %vm4053_vm6, %v1131_v47  ;;  %vm1235_vm6 = vcmp.ge.s32.totalorder %v3581_v15, 12 }
 0x34f   : > { %v1169_v48 = vpop.f32.mrf.mxu2 }
 0x350   : > { %v1183_v50 = vrot.slane %v1169_v48, 2  ;;  %v1184_v51 = vrot.slane %v1169_v48, 4  ;;  %v1185_v41 = vrot.slane %v1169_v48, 6  ;;  %v1207_v52 = vmul.f32 0.25, %v1169_v48 }
 0x352   : > { %v1208_v57 = vmul.f32 0.25, %v1183_v50  ;;  %v1209_v58 = vmul.f32 0.25, %v1184_v51  ;;  %v1210_v59 = vmul.f32 0.25, %v1185_v41  ;;  %v3709_v60 = vsel %vm1223_vm11, %v1207_v52, -1e+30 }
 0x353   : > { %vm1236_vm11 = vcmp.ge.s32.totalorder %v3581_v15, 13  ;;  %v1288_v21 = vsel %vm1287_vm15, %v3709_v60, -inf }
 0x354   : > { %v3719_v6 = vsel %vm1224_vm12, %v1208_v57, -1e+30  ;;  %v3723_v7 = vsel %vm1225_vm13, %v1209_v58, -1e+30  ;;  %v3727_v8 = vsel %vm1226_vm14, %v1210_v59, -1e+30 }
 0x355   : > { %v1289_v22 = vsel %vm1287_vm15, %v3719_v6, -inf  ;;  %v1290_v23 = vsel %vm1287_vm15, %v3723_v7, -inf  ;;  %v1291_v24 = vsel %vm1287_vm15, %v3727_v8, -inf }
 0x357   : > { %v1171_v49 = vpop.f32.mrf.mxu2 }
 0x358   : > { %v1186_v53 = vrot.slane %v1171_v49, 2  ;;  %v1187_v54 = vrot.slane %v1171_v49, 4  ;;  %v1188_v55 = vrot.slane %v1171_v49, 6  ;;  %v1211_v56 = vmul.f32 0.25, %v1171_v49 }
 0x35a   : > { %v1212_v61 = vmul.f32 0.25, %v1186_v53  ;;  %v1213_v62 = vmul.f32 0.25, %v1187_v54  ;;  %v1214_v63 = vmul.f32 0.25, %v1188_v55  ;;  %v3714_v0 = vsel %vm1227_vm0, %v1211_v56, -1e+30 }
 0x35b   : > { %vm1237_vm0 = vcmp.ge.s32.totalorder %v3581_v15, 14  ;;  %v1292_v9 = vsel %vm1287_vm15, %v3714_v0, -inf }
 0x35c   : > { %v3736_v14 = vsel %vm1228_vm3, %v1212_v61, -1e+30  ;;  %v3740_v16 = vsel %vm1229_vm4, %v1213_v62, -1e+30  ;;  %v3744_v17 = vsel %vm1230_vm5, %v1214_v63, -1e+30  ;;  %v1293_v29 = vmax.f32 %v1288_v21, %v1292_v9 }
 0x35d   : > { %v1294_v25 = vsel %vm1287_vm15, %v3736_v14, -inf  ;;  %v1296_v26 = vsel %vm1287_vm15, %v3740_v16, -inf  ;;  %v1298_v27 = vsel %vm1287_vm15, %v3744_v17, -inf }
 0x35e   : > { %v1295_v37 = vmax.f32 %v1289_v22, %v1294_v25  ;;  %v1297_v38 = vmax.f32 %v1290_v23, %v1296_v26  ;;  %v1299_v39 = vmax.f32 %v1291_v24, %v1298_v27 }
 0x35f   : > { %v1174_v1 = vpop.f32.mrf.mxu2 }
 0x360   : > { %v1189_v2 = vrot.slane %v1174_v1, 2  ;;  %v1190_v3 = vrot.slane %v1174_v1, 4  ;;  %v1191_v4 = vrot.slane %v1174_v1, 6  ;;  %v1215_v5 = vmul.f32 0.25, %v1174_v1 }
 0x362   : > { %v1216_v10 = vmul.f32 0.25, %v1189_v2  ;;  %v1217_v11 = vmul.f32 0.25, %v1190_v3  ;;  %v1218_v12 = vmul.f32 0.25, %v1191_v4  ;;  %v3748_v18 = vsel %vm1231_vm8, %v1215_v5, -1e+30 }
 0x363   : > { %v1300_v30 = vsel %vm1287_vm15, %v3748_v18, -inf }
 0x364   : > { %v3752_v19 = vsel %vm1232_vm7, %v1216_v10, -1e+30  ;;  %v3756_v20 = vsel %vm1233_vm9, %v1217_v11, -1e+30  ;;  %v3774_v28 = vsel %vm1234_vm10, %v1218_v12, -1e+30  ;;  %v1301_v46 = vmax.f32 %v1293_v29, %v1300_v30 }
 0x365   : > { %v1302_v31 = vsel %vm1287_vm15, %v3752_v19, -inf  ;;  %v1304_v32 = vsel %vm1287_vm15, %v3756_v20, -inf  ;;  %v1306_v40 = vsel %vm1287_vm15, %v3774_v28, -inf }
 0x366   : > { %v1303_v47 = vmax.f32 %v1295_v37, %v1302_v31  ;;  %v1305_v48 = vmax.f32 %v1297_v38, %v1304_v32  ;;  %v1307_v50 = vmax.f32 %v1299_v39, %v1306_v40 }
 0x367   : > { %v1176_v33 = vpop.f32.mrf.mxu2 }
 0x368   : > { %v1192_v34 = vrot.slane %v1176_v33, 2  ;;  %v1193_v13 = vrot.slane %v1176_v33, 4  ;;  %v1194_v35 = vrot.slane %v1176_v33, 6  ;;  %v1219_v36 = vmul.f32 0.25, %v1176_v33 }
 0x36a   : > { %v1220_v42 = vmul.f32 0.25, %v1192_v34  ;;  %v1221_v43 = vmul.f32 0.25, %v1193_v13  ;;  %v1222_v44 = vmul.f32 0.25, %v1194_v35  ;;  %v3786_v45 = vsel %vm1235_vm6, %v1219_v36, -1e+30 }
 0x36b   : > { %v1308_v49 = vsel %vm1287_vm15, %v3786_v45, -inf  ;;  %vm4094_vm6 = vcmask 517120  }
 0x36c   : > { %v3792_v51 = vsel %vm1236_vm11, %v1220_v42, -1e+30  ;;  %v3796_v41 = vsel %vm1237_vm0, %v1221_v43, -1e+30  ;;  %v3800_v52 = vsel %vm1238_vm1, %v1222_v44, -1e+30  ;;  %v1309_v56 = vmax.f32 %v1301_v46, %v1308_v49  ;;  %vm4095_vm12 = vmmov %vm4094_vm6 }
 0x36d   : > { %v1310_v53 = vsel %vm1287_vm15, %v3792_v51, -inf  ;;  %v1312_v54 = vsel %vm1287_vm15, %v3796_v41, -inf  ;;  %v1314_v55 = vsel %vm1287_vm15, %v3800_v52, -inf  ;;  %vm1473_vm1 = vcmask 31744   ;;  %vm4096_vm13 = vmmov %vm4094_vm6 }
 0x36e   : > { %v1311_v57 = vmax.f32 %v1303_v47, %v1310_v53  ;;  %v1313_v58 = vmax.f32 %v1305_v48, %v1312_v54  ;;  %v1315_v59 = vmax.f32 %v1307_v50, %v1314_v55  ;;  %vm4097_vm14 = vmmov %vm4094_vm6 }
 0x36f   : > { %vm4099_vm3 = vmmov %vm4094_vm6 }
 0x370   : > { %v1316_v61 = vmax.f32 %v1309_v56, %v1311_v57  ;;  %v1317_v62 = vmax.f32 %v1313_v58, %v1315_v59  ;;  %vm4100_vm4 = vmmov %vm4099_vm3 }
 0x371   : > { %vm4101_vm5 = vmmov %vm4099_vm3 }
 0x372   : > { %v3808_v63 = vmax.f32 %v1316_v61, %v1317_v62  ;;  %vm4102_vm8 = vmmov %vm4099_vm3 }
 0x373   : > { %vm4103_vm7 = vmmov %vm4099_vm3 }
 0x374   : > { %v1319_v15 = vsub.f32 %v3709_v60, %v3808_v63  ;;  %v1320_v1 = vsub.f32 %v3719_v6, %v3808_v63  ;;  %v1321_v2 = vsub.f32 %v3723_v7, %v3808_v63  ;;  %v1322_v3 = vsub.f32 %v3727_v8, %v3808_v63  ;;  %vm4104_vm9 = vmmov %vm4099_vm3 }
 0x375   : > { %v1323_v4 = vsub.f32 %v3714_v0, %v3808_v63  ;;  %v1324_v11 = vsub.f32 %v3736_v14, %v3808_v63  ;;  %v1325_v60 = vsub.f32 %v3740_v16, %v3808_v63  ;;  %v1326_v7 = vsub.f32 %v3744_v17, %v3808_v63  ;;  %vm4105_vm10 = vmmov %vm4099_vm3 }
 0x376   : > { %v1335_v5 = vmul.f32 1.442695, %v1319_v15  ;;  %v1337_v9 = vmul.f32 1.442695, %v1320_v1  ;;  %v1339_v10 = vmul.f32 1.442695, %v1321_v2  ;;  %v1327_v0 = vsub.f32 %v3748_v18, %v3808_v63  ;;  %vm4106_vm11 = vmmov %vm4099_vm3 }
 0x377   : > { %v1341_v12 = vmul.f32 1.442695, %v1322_v3  ;;  %v1343_v6 = vmul.f32 1.442695, %v1323_v4  ;;  %v1345_v8 = vmul.f32 1.442695, %v1324_v11  ;;  %v1328_v16 = vsub.f32 %v3752_v19, %v3808_v63  ;;  %vm4107_vm0 = vmmov %vm4099_vm3 }
 0x378   : > { %2883 = vpow2.f32 %v1335_v5  ;;  %v1347_v21 = vmul.f32 1.442695, %v1325_v60  ;;  %v1349_v23 = vmul.f32 1.442695, %v1326_v7  ;;  %v1329_v26 = vsub.f32 %v3756_v20, %v3808_v63  ;;  %v1431_v2 = vld [vmem:[%s4093_s4] sm:$0x3] }
 0x379   : > { %2885 = vpow2.f32 %v1337_v9  ;;  %v1351_v27 = vmul.f32 1.442695, %v1327_v0  ;;  %v1330_v31 = vsub.f32 %v3774_v28, %v3808_v63  ;;  %v1353_v32 = vmul.f32 1.442695, %v1328_v16 }
 0x37a   : > { %2887 = vpow2.f32 %v1339_v10  ;;  %v1331_v20 = vsub.f32 %v3786_v45, %v3808_v63  ;;  %v1355_v35 = vmul.f32 1.442695, %v1329_v26  ;;  %v1332_v28 = vsub.f32 %v3792_v51, %v3808_v63 }
 0x37b   : > { %2889 = vpow2.f32 %v1341_v12  ;;  %v1357_v39 = vmul.f32 1.442695, %v1330_v31  ;;  %v1333_v44 = vsub.f32 %v3796_v41, %v3808_v63  ;;  %v1334_v49 = vsub.f32 %v3800_v52, %v3808_v63 }
 0x37c   : > { %2891 = vpow2.f32 %v1343_v6  ;;  %v1359_v45 = vmul.f32 1.442695, %v1331_v20  ;;  %v1361_v50 = vmul.f32 1.442695, %v1332_v28  ;;  %v1479_v4 = vsel %vm791_vm2, %v1431_v2, 0  ;;  %v2847_v2 = vpop.permute.xlu0 %2846 }
 0x37d   : > { %2893 = vpow2.f32 %v1345_v8  ;;  %v1363_v55 = vmul.f32 1.442695, %v1333_v44  ;;  %v1365_v58 = vmul.f32 1.442695, %v1334_v49  ;;  %1488 = vmatpush.bf16.msra.mxu3 %v1479_v4 }
 0x37e   : > { %v3828_v22 = vpop.eup %2883  ;;  %2895 = vpow2.f32 %v1347_v21 }
 0x37f   : > { %v3830_v14 = vpop.eup %2885  ;;  %v1367_v24 = vsel %vm1287_vm15, %v3828_v22, 0.0  ;;  %2897 = vpow2.f32 %v1349_v23 }
 0x380   : > { %v3836_v17 = vpop.eup %2887  ;;  %v1368_v25 = vsel %vm1287_vm15, %v3830_v14, 0.0  ;;  %2899 = vpow2.f32 %v1351_v27 }
 0x381   : > { %v3840_v18 = vpop.eup %2889  ;;  %v1369_v29 = vadd.f32 %v1368_v25, %v1367_v24  ;;  %v1370_v19 = vsel %vm1287_vm15, %v3836_v17, 0.0  ;;  %2901 = vpow2.f32 %v1353_v32 }
 0x382   : > { %v3846_v30 = vpop.eup %2891  ;;  %v1372_v34 = vsel %vm1287_vm15, %v3840_v18, 0.0  ;;  %2903 = vpow2.f32 %v1355_v35 }
 0x383   : > { %v1371_v33 = vadd.f32 %v1370_v19, %v1369_v29  ;;  %v3852_v13 = vpop.eup %2893  ;;  %v1374_v37 = vsel %vm1287_vm15, %v3846_v30, 0.0  ;;  %2905 = vpow2.f32 %v1357_v39 }
 0x384   : > { %v2896_v38 = vpop.eup %2895  ;;  %v1376_v42 = vsel %vm1287_vm15, %v3852_v13, 0.0  ;;  %2907 = vpow2.f32 %v1359_v45 }
 0x385   : > { %v1373_v36 = vadd.f32 %v1372_v34, %v1371_v33  ;;  %v2898_v43 = vpop.eup %2897  ;;  %v1378_v47 = vsel %vm1287_vm15, %v2896_v38, 0.0  ;;  %2909 = vpow2.f32 %v1361_v50 }
 0x386   : > { %v3865_v48 = vpop.eup %2899  ;;  %v1380_v53 = vsel %vm1287_vm15, %v2898_v43, 0.0  ;;  %2911 = vpow2.f32 %v1363_v55  ;;  %v2842_v55 = vpop.permute.xlu2 %2841 }
 0x387   : > { %v1375_v40 = vadd.f32 %v1374_v37, %v1373_v36  ;;  %v2902_v54 = vpop.eup %2901  ;;  %v1382_v41 = vsel %vm1287_vm15, %v3865_v48, 0.0  ;;  %2913 = vpow2.f32 %v1365_v58 }
 0x388   : > { %v2904_v57 = vpop.eup %2903  ;;  %v1384_v61 = vsel %vm1287_vm15, %v2902_v54, 0.0 }
 0x389   : > { %v1377_v46 = vadd.f32 %v1376_v42, %v1375_v40  ;;  %v2906_v62 = vpop.eup %2905  ;;  %v1386_v63 = vsel %vm1287_vm15, %v2904_v57, 0.0 }
 0x38a   : > { %v2908_v15 = vpop.eup %2907  ;;  %v1388_v3 = vsel %vm1287_vm15, %v2906_v62, 0.0 }
 0x38b   : > { %v1379_v51 = vadd.f32 %v1378_v47, %v1377_v46  ;;  %v2910_v5 = vpop.eup %2909  ;;  %v1390_v10 = vsel %vm1287_vm15, %v2908_v15, 0.0 }
 0x38c   : > { %v2912_v11 = vpop.eup %2911  ;;  %v1392_v60 = vsel %vm1287_vm15, %v2910_v5, 0.0 }
 0x38d   : > { %v1381_v56 = vadd.f32 %v1380_v53, %v1379_v51  ;;  %v2914_v6 = vpop.eup %2913  ;;  %v1394_v8 = vsel %vm1287_vm15, %v2912_v11, 0.0  ;;  %v2687_v53 = vld [vmem:[%s3496_s24 + $0x18] sm:$0xff] }
 0x38e   : > { %v1396_v21 = vsel %vm1287_vm15, %v2914_v6, 0.0  ;;  %1679 = vmatpush.bf16.msrb.mxu0 %v2687_v53  ;;  %vm4098_vm15 = vmmov %vm4094_vm6 }
 0x38f   : > { %v1383_v59 = vadd.f32 %v1382_v41, %v1381_v56  ;;  %v2686_v56 = vld [vmem:[%s3496_s24 + $0x10] sm:$0xff] }
 0x391   : > { %v1385_v52 = vadd.f32 %v1384_v61, %v1383_v59  ;;  %v2685_v61 = vld [vmem:[%s3496_s24 + $0x8] sm:$0xff] }
 0x392   : > { %1680 = vmatpush.bf16.msrb.mxu0 %v2686_v56 }
 0x393   : > { %v1387_v1 = vadd.f32 %v1386_v63, %v1385_v52 }
 0x395   : > { %v1389_v9 = vadd.f32 %v1388_v3, %v1387_v1  ;;  %v2844_v1 = vunpack.i.h.bf16 %v2842_v55 }
 0x396   : > { %1681 = vmatpush.bf16.msrb.mxu0 %v2685_v61 }
 0x397   : > { %v1391_v12 = vadd.f32 %v1390_v10, %v1389_v9  ;;  %v2684_v9 = vld [vmem:[%s3496_s24] sm:$0xff]  ;;  %s4115_s24 = sld [smem:[#allocation33_spill]] (!%p2644_p1) }
 0x399   : > { %v1393_v7 = vadd.f32 %v1392_v60, %v1391_v12 }
 0x39a   : > { %1682 = vmatpush.bf16.msrb.mxu0 %v2684_v9 }
 0x39b   : > { %v1395_v0 = vadd.f32 %v1394_v8, %v1393_v7  ;;  %v2849_v8 = vunpack.i.h.bf16 %v2847_v2 }
 0x39d   : > { %v1397_v16 = vadd.f32 %v1396_v21, %v1395_v0 }
 0x39f   : > { %2915 = vrcp.f32 %v1397_v16 }
 0x3a5   : > { %v2916_v23 = vpop.eup %2915 }
 0x3a6   : > { %v1399_v24 = vmul.f32 %v2916_v23, %v3828_v22  ;;  %v1400_v25 = vmul.f32 %v2916_v23, %v3830_v14  ;;  %v1401_v26 = vmul.f32 %v2916_v23, %v3836_v17  ;;  %v1406_v27 = vmul.f32 %v2916_v23, %v2898_v43 }
 0x3a7   : > { %v1402_v29 = vmul.f32 %v2916_v23, %v3840_v18  ;;  %v1403_v19 = vmul.f32 %v2916_v23, %v3846_v30  ;;  %v1404_v31 = vmul.f32 %v2916_v23, %v3852_v13  ;;  %v1405_v34 = vmul.f32 %v2916_v23, %v2896_v38 }
 0x3a8   : > { %v1415_v32 = vpack.c.bf16 %v1399_v24, %v1399_v24  ;;  %v1416_v33 = vpack.c.bf16 %v1400_v25, %v1400_v25  ;;  %v1417_v20 = vpack.c.bf16 %v1401_v26, %v1401_v26  ;;  %v1422_v35 = vpack.c.bf16 %v1406_v27, %v1406_v27 }
 0x3a9   : > { %v1418_v36 = vpack.c.bf16 %v1402_v29, %v1402_v29  ;;  %v1419_v37 = vpack.c.bf16 %v1403_v19, %v1403_v19  ;;  %v1420_v22 = vpack.c.bf16 %v1404_v31, %v1404_v31  ;;  %v1421_v14 = vpack.c.bf16 %v1405_v34, %v1405_v34  ;;  %v2857_v31 = vpop.permute.xlu2 %2856 }
 0x3aa   : > { %1433 = vst [vmem:[#allocation1] ss:$9 sm:$0xff] %v1415_v32  ;;  %v1407_v17 = vmul.f32 %v2916_v23, %v3865_v48  ;;  %v1408_v18 = vmul.f32 %v2916_v23, %v2902_v54  ;;  %v1409_v30 = vmul.f32 %v2916_v23, %v2904_v57  ;;  %v1410_v13 = vmul.f32 %v2916_v23, %v2906_v62  ;;  %v2837_v54 = vpop.permute.xlu1 %2836 }
 0x3ab   : > { %1454 = vst [vmem:[#allocation1 + $0x7] ss:$9 sm:$0xff] %v1422_v35  ;;  %v1411_v38 = vmul.f32 %v2916_v23, %v2908_v15  ;;  %v1412_v39 = vmul.f32 %v2916_v23, %v2910_v5  ;;  %v1413_v43 = vmul.f32 %v2916_v23, %v2912_v11  ;;  %v1414_v45 = vmul.f32 %v2916_v23, %v2914_v6 }
 0x3ac   : > { %1436 = vst [vmem:[#allocation1 + $0x1] ss:$9 sm:$0xff] %v1416_v33  ;;  %v1423_v28 = vpack.c.bf16 %v1407_v17, %v1407_v17  ;;  %v1424_v40 = vpack.c.bf16 %v1408_v18, %v1408_v18  ;;  %v1425_v44 = vpack.c.bf16 %v1409_v30, %v1409_v30  ;;  %v1426_v46 = vpack.c.bf16 %v1410_v13, %v1410_v13 }
 0x3ad   : > { %1439 = vst [vmem:[#allocation1 + $0x2] ss:$9 sm:$0xff] %v1417_v20  ;;  %v1427_v47 = vpack.c.bf16 %v1411_v38, %v1411_v38  ;;  %v1428_v48 = vpack.c.bf16 %v1412_v39, %v1412_v39  ;;  %v1429_v49 = vpack.c.bf16 %v1413_v43, %v1413_v43  ;;  %v1430_v50 = vpack.c.bf16 %v1414_v45, %v1414_v45 }
 0x3ae   : > { %1442 = vst [vmem:[#allocation1 + $0x3] ss:$9 sm:$0xff] %v1418_v36  ;;  %v2838_v41 = vunpack.i.l.bf16 %v2837_v54  ;;  %v2843_v57 = vunpack.i.l.bf16 %v2842_v55  ;;  %v2839_v58 = vunpack.i.h.bf16 %v2837_v54  ;;  %v2848_v6 = vunpack.i.l.bf16 %v2847_v2  ;;  %v2862_v36 = vpop.permute.xlu0 %2861 }
 0x3af   : > { %1445 = vst [vmem:[#allocation1 + $0x4] ss:$9 sm:$0xff] %v1419_v37  ;;  %v2859_v18 = vunpack.i.h.bf16 %v2857_v31  ;;  %v2863_v30 = vunpack.i.l.bf16 %v2862_v36 }
 0x3b0   : > { %1448 = vst [vmem:[#allocation1 + $0x5] ss:$9 sm:$0xff] %v1420_v22 }
 0x3b1   : > { %1451 = vst [vmem:[#allocation1 + $0x6] ss:$9 sm:$0xff] %v1421_v14  ;;  %v2858_v14 = vunpack.i.l.bf16 %v2857_v31  ;;  %v2872_v53 = vpop.permute.xlu2 %2871 }
 0x3b2   : > { %v2852_v10 = vpop.permute.xlu1 %2851 }
 0x3b3   : > { %v2853_v0 = vunpack.i.l.bf16 %v2852_v10  ;;  %v2854_v29 = vunpack.i.h.bf16 %v2852_v10 }
 0x3b8   : > { %v1455_v42 = vld [vmem:[#allocation1] sm:$0xff] }
 0x3b9   : > { %2479 = vmatmul.msk.bf16.vlgmr.msra.gmra.mxu3 %vm1473_vm1, %v1455_v42  ;;  %1457 = vst [vmem:[#allocation1] ss:$9 sm:$0xff] %v1423_v28 }
 0x3ba   : > { %1459 = vst [vmem:[#allocation1 + $0x1] ss:$9 sm:$0xff] %v1424_v40 }
 0x3bb   : > { %1461 = vst [vmem:[#allocation1 + $0x2] ss:$9 sm:$0xff] %v1425_v44  ;;  %v2864_v44 = vunpack.i.h.bf16 %v2862_v36 }
 0x3bc   : > { %1463 = vst [vmem:[#allocation1 + $0x3] ss:$9 sm:$0xff] %v1426_v46 }
 0x3bd   : > { %1465 = vst [vmem:[#allocation1 + $0x4] ss:$9 sm:$0xff] %v1427_v47 }
 0x3be   : > { %1467 = vst [vmem:[#allocation1 + $0x5] ss:$9 sm:$0xff] %v1428_v48 }
 0x3bf   : > { %1469 = vst [vmem:[#allocation1 + $0x6] ss:$9 sm:$0xff] %v1429_v49  ;;  %v2867_v49 = vpop.permute.xlu1 %2866 }
 0x3c0   : > { %1471 = vst [vmem:[#allocation1 + $0x7] ss:$9 sm:$0xff] %v1430_v50  ;;  %v2868_v56 = vunpack.i.l.bf16 %v2867_v49 }
 0x3c7   : > { %v1472_v51 = vld [vmem:[#allocation1] sm:$0xff] }
 0x3c9   : > { %2480 = vmatmul.msk.bf16.gmra.mxu3 %vm1473_vm1, %v1472_v51  ;;  %vm4108_vm1 = vmmov %vm4107_vm0 }
 0x43c   : > { %v1490_v59 = vpop.f32.mrf.mxu3 }
 0x43d   : > { %v1504_v62 = vrot.slane %v1490_v59, 2  ;;  %v1505_v52 = vrot.slane %v1490_v59, 4  ;;  %v1506_v63 = vrot.slane %v1490_v59, 6  ;;  %v1592_v15 = vmul.f32 %v2838_v41, %v1490_v59 }
 0x43f   : > { %v1593_v3 = vmul.f32 %v2839_v58, %v1504_v62  ;;  %v1594_v4 = vmul.f32 %v2843_v57, %v1505_v52  ;;  %v1595_v5 = vmul.f32 %v2844_v1, %v1506_v63  ;;  %v1608_v11 = vsel %vm4094_vm6, %v1592_v15, 0.0  ;;  %vm4109_vm6 = vmmov %vm4107_vm0 }
 0x440   : > { %v2873_v57 = vunpack.i.l.bf16 %v2872_v53  ;;  %v2869_v58 = vunpack.i.h.bf16 %v2867_v49  ;;  %v2557_v49 = vld [vmem:[%s3501_s10 + $0x50] sm:$0xf] }
 0x441   : > { %v1609_v12 = vsel %vm4095_vm12, %v1593_v3, 0.0  ;;  %v1611_v7 = vsel %vm4096_vm13, %v1594_v4, 0.0  ;;  %v1613_v16 = vsel %vm4097_vm14, %v1595_v5, 0.0  ;;  %v2874_v3 = vunpack.i.h.bf16 %v2872_v53  ;;  %vm4111_vm13 = vmmov %vm4107_vm0 }
 0x442   : > { %v1610_v60 = vadd.f32 %v1609_v12, %v1608_v11  ;;  %vm4110_vm12 = vcmask 523264  }
 0x444   : > { %v1612_v21 = vadd.f32 %v1611_v7, %v1610_v60  ;;  %v1492_v23 = vpop.f32.mrf.mxu3 }
 0x445   : > { %v1507_v24 = vrot.slane %v1492_v23, 2  ;;  %v1508_v25 = vrot.slane %v1492_v23, 4  ;;  %v1509_v26 = vrot.slane %v1492_v23, 6  ;;  %v1596_v27 = vmul.f32 %v2848_v6, %v1492_v23  ;;  %v2923_v23 = vld [vmem:[#allocation2] sm:$0x3] }
 0x446   : > { %v1614_v19 = vadd.f32 %v1613_v16, %v1612_v21 }
 0x447   : > { %v1597_v32 = vmul.f32 %v2849_v8, %v1507_v24  ;;  %v1598_v33 = vmul.f32 %v2853_v0, %v1508_v25  ;;  %v1615_v34 = vsel %vm4098_vm15, %v1596_v27, 0.0  ;;  %v1599_v20 = vmul.f32 %v2854_v29, %v1509_v26  ;;  %v2691_v29 = vld [vmem:[%s3476_s1 + $0x18] sm:$0xff] }
 0x448   : > { %v1616_v35 = vadd.f32 %v1615_v34, %v1614_v19  ;;  %1765 = vmatpush.bf16.msrb.mxu1 %v2691_v29 }
 0x449   : > { %v1617_v37 = vsel %vm4099_vm3, %v1597_v32, 0.0  ;;  %v1619_v17 = vsel %vm4100_vm4, %v1598_v33, 0.0  ;;  %v1621_v38 = vsel %vm4101_vm5, %v1599_v20, 0.0  ;;  %v2690_v32 = vld [vmem:[%s3476_s1 + $0x10] sm:$0xff]  ;;  %v2689_v20 = vld [vmem:[%s3476_s1 + $0x8] sm:$0xff]  ;;  %vm4112_vm4 = vmmov %vm4110_vm12 }
 0x44a   : > { %v1618_v22 = vadd.f32 %v1617_v37, %v1616_v35  ;;  %v2688_v37 = vld [vmem:[%s3476_s1] sm:$0xff] }
 0x44c   : > { %v1620_v13 = vadd.f32 %v1619_v17, %v1618_v22  ;;  %v1495_v28 = vpop.f32.mrf.mxu3  ;;  %1766 = vmatpush.bf16.msrb.mxu1 %v2690_v32  ;;  %v2575_v17 = vld [vmem:[%s3501_s10 + $0x78] sm:$0xf0] }
 0x44d   : > { %v1510_v39 = vrot.slane %v1495_v28, 2  ;;  %v1511_v40 = vrot.slane %v1495_v28, 4  ;;  %v1512_v42 = vrot.slane %v1495_v28, 6  ;;  %v1600_v43 = vmul.f32 %v2858_v14, %v1495_v28  ;;  %v2706_v14 = vld [vmem:[%s3501_s10 + $0x74] sm:$0xf] }
 0x44e   : > { %v1622_v45 = vadd.f32 %v1621_v38, %v1620_v13  ;;  %v2707_v13 = vld [vmem:[%s3501_s10 + $0x74] sm:$0xf0]  ;;  %v2704_v38 = vld [vmem:[%s3501_s10 + $0x64] sm:$0xf] }
 0x44f   : > { %v1601_v46 = vmul.f32 %v2859_v18, %v1510_v39  ;;  %v1602_v47 = vmul.f32 %v2863_v30, %v1511_v40  ;;  %v1623_v48 = vsel %vm4102_vm8, %v1600_v43, 0.0  ;;  %v1603_v50 = vmul.f32 %v2864_v44, %v1512_v42  ;;  %v2573_v30 = vld [vmem:[%s3501_s10 + $0x70] sm:$0xf]  ;;  %v2567_v40 = vld [vmem:[%s3501_s10 + $0x68] sm:$0xf0] }
 0x450   : > { %v1624_v51 = vadd.f32 %v1623_v48, %v1622_v45  ;;  %1767 = vmatpush.bf16.msrb.mxu1 %v2689_v20  ;;  %v2578_v18 = vor.u32 %v2706_v14, %v2575_v17  ;;  %v2574_v39 = vor.u32 %v2707_v13, %v2573_v30  ;;  %v2565_v42 = vld [vmem:[%s3501_s10 + $0x60] sm:$0xf]  ;;  %v2705_v43 = vld [vmem:[%s3501_s10 + $0x64] sm:$0xf0]  ;;  %v2570_v44 = vor.u32 %v2704_v38, %v2567_v40  ;;  %v2559_v48 = vld [vmem:[%s3501_s10 + $0x58] sm:$0xf0] }
 0x451   : > { %v1625_v54 = vsel %vm4103_vm7, %v1601_v46, 0.0  ;;  %v1627_v41 = vsel %vm4104_vm9, %v1602_v47, 0.0  ;;  %v1629_v61 = vsel %vm4105_vm10, %v1603_v50, 0.0  ;;  %v2566_v46 = vor.u32 %v2705_v43, %v2565_v42  ;;  %v2702_v47 = vld [vmem:[%s3501_s10 + $0x54] sm:$0xf]  ;;  %v2715_v13 = vld [vmem:[%s3478_s29 + $0x38] sm:$0xff]  ;;  %vm4113_vm10 = vmmov %vm4107_vm0 }
 0x452   : > { %v1626_v55 = vadd.f32 %v1625_v54, %v1624_v51  ;;  %1889 = vmatpush.bf16.msrb.mxu2 %v2578_v18  ;;  %1876 = vmatpush.bf16.msrb.mxu3 %v2574_v39  ;;  %v2703_v50 = vld [vmem:[%s3501_s10 + $0x54] sm:$0xf0]  ;;  %v2562_v53 = vor.u32 %v2702_v47, %v2559_v48  ;;  %v2517_v20 = vld [vmem:[%s3501_s10] sm:$0xf]  ;;  %v2712_v39 = vld [vmem:[%s3478_s29 + $0x20] sm:$0xff] }
 0x453   : > { %v2558_v54 = vor.u32 %v2703_v50, %v2557_v49  ;;  %1991 = vmatpush.bf16.msra.mxu0 %v2715_v13  ;;  %v2714_v38 = vld [vmem:[%s3478_s29 + $0x30] sm:$0xff]  ;;  %v1691_v40 = vld [vmem:[%s3516_s15 + $0x3] sm:$0x3]  ;;  %v2711_v42 = vld [vmem:[%s3478_s29 + $0x18] sm:$0xff] }
 0x454   : > { %v1628_v59 = vadd.f32 %v1627_v41, %v1626_v55  ;;  %v1497_v62 = vpop.f32.mrf.mxu3  ;;  %1768 = vmatpush.bf16.msrb.mxu1 %v2688_v37  ;;  %v2700_v55 = vld [vmem:[%s3501_s10 + $0x44] sm:$0xf]  ;;  %v2549_v41 = vld [vmem:[%s3501_s10 + $0x40] sm:$0xf]  ;;  %v1793_v43 = vperm.slane %v1691_v40, 1  ;;  %v2709_v49 = vld [vmem:[%s3478_s29 + $0x8] sm:$0xff] }
 0x455   : > { %v1513_v52 = vrot.slane %v1497_v62, 2  ;;  %v1514_v63 = vrot.slane %v1497_v62, 4  ;;  %v1515_v15 = vrot.slane %v1497_v62, 6  ;;  %v1604_v1 = vmul.f32 %v2868_v56, %v1497_v62  ;;  %v2551_v56 = vld [vmem:[%s3501_s10 + $0x48] sm:$0xf0] }
 0x456   : > { %v1630_v2 = vadd.f32 %v1629_v61, %v1628_v59  ;;  %1890 = vmatpush.bf16.msrb.mxu2 %v2570_v44  ;;  %1877 = vmatpush.bf16.msrb.mxu3 %v2566_v46  ;;  %v2698_v61 = vld [vmem:[%s3501_s10 + $0x34] sm:$0xf]  ;;  %v2543_v62 = vld [vmem:[%s3501_s10 + $0x38] sm:$0xf0]  ;;  %v2708_v50 = vld [vmem:[%s3478_s29] sm:$0xff] }
 0x457   : > { %v1605_v4 = vmul.f32 %v2869_v58, %v1513_v52  ;;  %v1606_v5 = vmul.f32 %v2873_v57, %v1514_v63  ;;  %v1631_v9 = vsel %vm4106_vm11, %v1604_v1, 0.0  ;;  %v1607_v11 = vmul.f32 %v2874_v3, %v1515_v15  ;;  %v2701_v57 = vld [vmem:[%s3501_s10 + $0x44] sm:$0xf0]  ;;  %v2541_v52 = vld [vmem:[%s3501_s10 + $0x30] sm:$0xf]  ;;  %1992 = vmatpush.bf16.msra.mxu0 %v2714_v38  ;;  %v2710_v44 = vld [vmem:[%s3478_s29 + $0x10] sm:$0xff] }
 0x458   : > { %v1632_v10 = vadd.f32 %v1631_v9, %v1630_v2  ;;  %v2554_v58 = vor.u32 %v2700_v55, %v2551_v56  ;;  %v2550_v59 = vor.u32 %v2701_v57, %v2549_v41  ;;  %v2699_v63 = vld [vmem:[%s3501_s10 + $0x34] sm:$0xf0]  ;;  %v2546_v2 = vor.u32 %v2698_v61, %v2543_v62  ;;  %v2721_v41 = vld [vmem:[%s3506_s26 + $0x28] sm:$0xff] }
 0x459   : > { %v1633_v12 = vsel %vm4107_vm0, %v1605_v4, 0.0  ;;  %v1635_v6 = vsel %vm4108_vm1, %v1606_v5, 0.0  ;;  %v1637_v8 = vsel %vm4109_vm6, %v1607_v11, 0.0  ;;  %v2542_v3 = vor.u32 %v2699_v63, %v2541_v52  ;;  %v2696_v4 = vld [vmem:[%s3501_s10 + $0x24] sm:$0xf]  ;;  %v2718_v63 = vld [vmem:[%s3506_s26 + $0x10] sm:$0xff] }
 0x45a   : > { %v1634_v60 = vadd.f32 %v1633_v12, %v1632_v10  ;;  %1891 = vmatpush.bf16.msrb.mxu2 %v2562_v53  ;;  %1878 = vmatpush.bf16.msrb.mxu3 %v2558_v54  ;;  %v2535_v5 = vld [vmem:[%s3501_s10 + $0x28] sm:$0xf0]  ;;  %v2533_v10 = vld [vmem:[%s3501_s10 + $0x20] sm:$0xf]  ;;  %v2697_v11 = vld [vmem:[%s3501_s10 + $0x24] sm:$0xf0] }
 0x45b   : > { %v2722_v53 = vld [vmem:[%s3506_s26 + $0x30] sm:$0xff] }
 0x45c   : > { %v1636_v7 = vadd.f32 %v1635_v6, %v1634_v60  ;;  %v2538_v60 = vor.u32 %v2696_v4, %v2535_v5  ;;  %v2534_v6 = vor.u32 %v2697_v11, %v2533_v10  ;;  %v2717_v5 = vld [vmem:[%s3506_s26 + $0x8] sm:$0xff] }
 0x45e   : > { %v1638_v0 = vadd.f32 %v1637_v8, %v1636_v7  ;;  %1892 = vmatpush.bf16.msrb.mxu2 %v2554_v58  ;;  %1879 = vmatpush.bf16.msrb.mxu3 %v2550_v59  ;;  %v2694_v7 = vld [vmem:[%s3501_s10 + $0x14] sm:$0xf]  ;;  %v2527_v8 = vld [vmem:[%s3501_s10 + $0x18] sm:$0xf0]  ;;  %v2720_v58 = vld [vmem:[%s3506_s26 + $0x20] sm:$0xff] }
 0x45f   : > { %v2719_v59 = vld [vmem:[%s3506_s26 + $0x18] sm:$0xff] }
 0x460   : > { %v1639_v21 = vpack.c.bf16 %v1638_v0, %v1638_v0 }
 0x462   : > { %2497 = vmatmul.msk.bf16.vlgmr.msrb.gmra.mxu0 %vm4110_vm12, %v1639_v21  ;;  %1893 = vmatpush.bf16.msrb.mxu2 %v2546_v2  ;;  %v2525_v21 = vld [vmem:[%s3501_s10 + $0x10] sm:$0xf] }
 0x463   : > { %1880 = vmatpush.bf16.msrb.mxu3 %v2542_v3  ;;  %v1792_v3 = vperm.slane %v1691_v40, 0 }
 0x466   : > { %1894 = vmatpush.bf16.msrb.mxu2 %v2538_v60 }
 0x467   : > { %1881 = vmatpush.bf16.msrb.mxu3 %v2534_v6 }
 0x4df   : > { %v1684_v16 = vpop.f32.mrf.mxu0 }
 0x4e0   : > { %v3913_v24 = vadd.f32 %v2923_v23, %v1684_v16  ;;  %v2695_v16 = vld [vmem:[%s3501_s10 + $0x14] sm:$0xf0] }
 0x4e2   : > { %v1694_v25 = vmul.f32 %v3913_v24, %v3913_v24 }
 0x4e4   : > { %v1695_v26 = vsel %vm4111_vm13, %v1694_v25, 0.0  ;;  %v2530_v25 = vor.u32 %v2694_v7, %v2527_v8  ;;  %v2716_v8 = vld [vmem:[%s3506_s26] sm:$0xff] }
 0x4e5   : > { %1696 = vadd.xlane.f32.xlu0 %v1695_v26  ;;  %v2877_v26 = vld [vmem:[%s3516_s15 + $0x1] ss:$0 sm:$0xff] }
 0x4e6   : > { %1895 = vmatpush.bf16.msrb.mxu2 %v2530_v25 }
 0x4e7   : > { %v1686_v27 = vpop.f32.mrf.mxu0 }
 0x4e8   : > { %v2526_v27 = vor.u32 %v2695_v16, %v2525_v21 }
 0x4ea   : > { %1882 = vmatpush.bf16.msrb.mxu3 %v2526_v27 }
 0x558   : > { %v1697_v19 = vpop.xlane.xlu0 %1696 }
 0x559   : > { %v1698_v31 = vsel %vm791_vm2, %v1697_v19, 0.0 }
 0x55a   : > { %v1699_v33 = vrot.slane %v1698_v31, 4 }
 0x55c   : > { %v1700_v34 = vadd.f32 %v1699_v33, %v1698_v31  ;;  %v2692_v33 = vld [vmem:[%s3501_s10 + $0x4] sm:$0xf] }
 0x55e   : > { %v1701_v35 = vrot.slane %v1700_v34, 2 }
 0x560   : > { %v1702_v36 = vadd.f32 %v1701_v35, %v1700_v34  ;;  %v2519_v34 = vld [vmem:[%s3501_s10 + $0x8] sm:$0xf0] }
 0x561   : > { %v2522_v35 = vor.u32 %v2692_v33, %v2519_v34 }
 0x562   : > { %v1703_v22 = vrot.slane %v1702_v36, 1 }
 0x563   : > { %1896 = vmatpush.bf16.msrb.mxu2 %v2522_v35 }
 0x564   : > { %v1704_v28 = vadd.f32 %v1703_v22, %v1702_v36  ;;  %v2693_v36 = vld [vmem:[%s3501_s10 + $0x4] sm:$0xf0]  ;;  %v2878_v22 = vld [vmem:[%s3516_s15 + $0x2] ss:$0 sm:$0xff] }
 0x565   : > { %v2518_v37 = vor.u32 %v2693_v36, %v2517_v20 }
 0x566   : > { %v1705_v45 = vmul.f32 0.0078125, %v1704_v28  ;;  %v2713_v28 = vld [vmem:[%s3478_s29 + $0x28] sm:$0xff] }
 0x567   : > { %1883 = vmatpush.bf16.msrb.mxu3 %v2518_v37  ;;  %1993 = vmatpush.bf16.msra.mxu0 %v2713_v28 }
 0x568   : > { %v1706_v51 = vadd.f32 1e-06, %v1705_v45 }
 0x56a   : > { %2917 = vrsqrt.f32 %v1706_v51  ;;  %vm1713_vm15 = vweird.f32 %v1706_v51 }
 0x56b   : > { %1994 = vmatpush.bf16.msra.mxu0 %v2712_v39 }
 0x56f   : > { %1995 = vmatpush.bf16.msra.mxu0 %v2711_v42 }
 0x570   : > { %v2918_v15 = vpop.eup %2917 }
 0x571   : > { %v1708_v1 = vmul.f32 %v2918_v15, %v1706_v51  ;;  %vm1714_vm14 = vweird.f32 %v2918_v15  ;;  %v2723_v51 = vld [vmem:[%s3506_s26 + $0x38] sm:$0xff] }
 0x572   : > { %vm1715_vm3 = vmor %vm1713_vm15, %vm1714_vm14  ;;  %2072 = vmatpush.bf16.msra.mxu1 %v2723_v51 }
 0x573   : > { %v1709_v9 = vmul.f32 %v2918_v15, %v1708_v1  ;;  %1996 = vmatpush.bf16.msra.mxu0 %v2710_v44 }
 0x575   : > { %v1710_v12 = vmul.f32 0.5, %v1709_v9 }
 0x576   : > { %2073 = vmatpush.bf16.msra.mxu1 %v2722_v53 }
 0x577   : > { %v1711_v0 = vsub.f32 1.5, %v1710_v12  ;;  %1997 = vmatpush.bf16.msra.mxu0 %v2709_v49 }
 0x579   : > { %v1712_v23 = vmul.f32 %v2918_v15, %v1711_v0  ;;  %v2879_v0 = vld [vmem:[%s3516_s15 + $0x5] ss:$0 sm:$0xff] }
 0x57a   : > { %2074 = vmatpush.bf16.msra.mxu1 %v2721_v41 }
 0x57b   : > { %v1716_v29 = vsel %vm1715_vm3, %v2918_v15, %v1712_v23  ;;  %1998 = vmatpush.bf16.msra.mxu0 %v2708_v50 }
 0x57c   : > { %v1717_v19 = vmul.f32 %v1716_v29, %v3913_v24 }
 0x57e   : > { %v1721_v31 = vmul.f32 %v2877_v26, %v1717_v19  ;;  %2075 = vmatpush.bf16.msra.mxu1 %v2720_v58  ;;  %v2880_v26 = vld [vmem:[%s3516_s15 + $0x6] ss:$0 sm:$0xff] }
 0x580   : > { %v1722_v32 = vpack.c.bf16 %v1721_v31, %v1721_v31 }
 0x582   : > { %2514 = vmatmul.msk.bf16.vlgmr.msrb.gmra.mxu1 %vm4112_vm4, %v1722_v32 }
 0x583   : > { %2076 = vmatpush.bf16.msra.mxu1 %v2719_v59 }
 0x587   : > { %2077 = vmatpush.bf16.msra.mxu1 %v2718_v63 }
 0x58b   : > { %2078 = vmatpush.bf16.msra.mxu1 %v2717_v5 }
 0x58f   : > { %2079 = vmatpush.bf16.msra.mxu1 %v2716_v8 }
 0x5ff   : > { %v1770_v14 = vpop.f32.mrf.mxu1 }
 0x600   : > { %v1771_v17 = vadd.f32 %v2878_v22, %v1770_v14 }
 0x602   : > { %v1774_v18 = vpack.c.bf16 %v1771_v17, %v1771_v17 }
 0x604   : > { %1884 = vmatmul.bf16.vlgmr.msrb.gmra.mxu3 %v1774_v18  ;;  %1897 = vmatmul.bf16.vlgmr.msrb.gmra.mxu2 %v1774_v18 }
 0x607   : > { %v1772_v30 = vpop.f32.mrf.mxu1 }
 0x687   : > { %v1885_v45 = vpop.f32.mrf.mxu3  ;;  %v1898_v46 = vpop.f32.mrf.mxu2 }
 0x688   : > { %v1899_v47 = vadd.f32 %v1898_v46, %v1793_v43  ;;  %v1886_v12 = vadd.f32 %v1885_v45, %v1792_v3 }
 0x68a   : > { %v2579_v48 = vmul.f32 -1.442695, %v1899_v47 }
 0x68c   : > { %2919 = vpow2.f32 %v2579_v48 }
 0x68f   : > { %v1887_v54 = vpop.f32.mrf.mxu3  ;;  %v1900_v55 = vpop.f32.mrf.mxu2 }
 0x692   : > { %v2920_v56 = vpop.eup %2919 }
 0x693   : > { %v1905_v57 = vadd.f32 1.0, %v2920_v56 }
 0x695   : > { %2921 = vrcp.f32 %v1905_v57  ;;  %v1917_v15 = vand.u32 2147483648, %v1905_v57  ;;  %v1915_v2 = vand.u32 2147483647, %v1905_v57  ;;  %vm1911_vm8 = vweird.f32 %v1905_v57 }
 0x697   : > { %v1918_v9 = vor.u32 1.1754944e-38, %v1917_v15  ;;  %vm1916_vm9 = vcmp.eq.f32.partialorder %v1915_v2, 8.507059e+37 }
 0x69b   : > { %v2922_v61 = vpop.eup %2921 }
 0x69c   : > { %v1907_v62 = vmul.f32 %v2922_v61, %v1905_v57  ;;  %vm1912_vm5 = vweird.f32 %v2922_v61 }
 0x69d   : > { %vm1913_vm7 = vmor %vm1911_vm8, %vm1912_vm5 }
 0x69e   : > { %v1908_v52 = vsub.f32 1.0, %v1907_v62 }
 0x6a0   : > { %v1909_v1 = vmul.f32 %v2922_v61, %v1908_v52 }
 0x6a2   : > { %v1910_v4 = vadd.f32 %v2922_v61, %v1909_v1 }
 0x6a4   : > { %v1914_v10 = vsel %vm1913_vm7, %v2922_v61, %v1910_v4 }
 0x6a5   : > { %v1919_v11 = vsel %vm1916_vm9, %v1918_v9, %v1914_v10 }
 0x6a6   : > { %v1921_v60 = vmul.f32 %v1919_v11, %v1899_v47 }
 0x6a8   : > { %v1922_v6 = vmul.f32 %v1921_v60, %v1886_v12 }
 0x6aa   : > { %v1923_v7 = vpack.c.bf16 %v1922_v6, %v1922_v6 }
 0x6ac   : > { %1999 = vmatmul.bf16.vlgmr.msra.gmra.mxu0 %v1923_v7 }
 0x729   : > { %v2000_v21 = vpop.f32.mrf.mxu0 }
 0x72a   : > { %v2001_v16 = vadd.f32 %v2879_v0, %v2000_v21 }
 0x72c   : > { %v2004_v23 = vpack.c.bf16 %v2001_v16, %v2001_v16 }
 0x72e   : > { %2080 = vmatmul.bf16.vlgmr.msra.gmra.mxu1 %v2004_v23 }
 0x731   : > { %v2002_v25 = vpop.f32.mrf.mxu0 }
 0x7ab   : > { %v2081_v27 = vpop.f32.mrf.mxu1 }
 0x7ac   : > { %v2082_v29 = vadd.f32 %v2880_v26, %v2081_v27 }
 0x7ae   : > { %v2085_v19 = vadd.f32 %v2082_v29, %v3913_v24 }
 0x7af   : > { %2090 = sbr.rel (%p2644_p1) target bundleno = 2266 (0x8da), region = 108 }
 0x7b0   : > { %2086 = vst.msk [vmem:[#allocation2] sm:$0x3] %vm4113_vm10, %v2085_v19 }
 0x7b3   : > { %v2083_v31 = vpop.f32.mrf.mxu1 }
 0x7b4   : > { %v2092_v32 = vmul.f32 %v2085_v19, %v2085_v19  ;;  %vm4114_vm11 = vcmask 517120   ;;  %v2727_v34 = vld [vmem:[%s4115_s24 + $0x18] sm:$0xff]  ;;  %v2726_v20 = vld [vmem:[%s4115_s24 + $0x10] sm:$0xff]  ;;  %v2725_v24 = vld [vmem:[%s4115_s24 + $0x8] sm:$0xff]  ;;  %vm4117_vm6 = vcmask 523264  }
 0x7b5   : > { %2164 = vmatpush.bf16.msra.mxu0 %v2727_v34  ;;  %v2724_v22 = vld [vmem:[%s4115_s24] sm:$0xff] }
 0x7b6   : > { %v2093_v33 = vsel %vm4114_vm11, %v2092_v32, 0.0  ;;  %v2924_v46 = vld [vmem:[%s4116_s6] ss:$0 sm:$0xff] }
 0x7b7   : > { %2094 = vadd.xlane.f32.xlu0 %v2093_v33  ;;  %v2925_v51 = vld [vmem:[%s4118_s22] ss:$0 sm:$0xff] }
 0x7b9   : > { %2165 = vmatpush.bf16.msra.mxu0 %v2726_v20 }
 0x7bd   : > { %2166 = vmatpush.bf16.msra.mxu0 %v2725_v24 }
 0x7c1   : > { %2167 = vmatpush.bf16.msra.mxu0 %v2724_v22 }
 0x82a   : > { %v2095_v35 = vpop.xlane.xlu0 %2094 }
 0x82b   : > { %v2096_v36 = vsel %vm791_vm2, %v2095_v35, 0.0 }
 0x82c   : > { %v2097_v37 = vrot.slane %v2096_v36, 4 }
 0x82e   : > { %v2098_v14 = vadd.f32 %v2097_v37, %v2096_v36 }
 0x830   : > { %v2099_v17 = vrot.slane %v2098_v14, 2 }
 0x832   : > { %v2100_v18 = vadd.f32 %v2099_v17, %v2098_v14 }
 0x834   : > { %v2101_v30 = vrot.slane %v2100_v18, 1 }
 0x836   : > { %v2102_v13 = vadd.f32 %v2101_v30, %v2100_v18 }
 0x838   : > { %v2103_v38 = vmul.f32 0.0078125, %v2102_v13 }
 0x83a   : > { %v2104_v28 = vadd.f32 1e-06, %v2103_v38 }
 0x83c   : > { %2926 = vrsqrt.f32 %v2104_v28  ;;  %vm2111_vm0 = vweird.f32 %v2104_v28 }
 0x842   : > { %v2927_v39 = vpop.eup %2926 }
 0x843   : > { %v2106_v40 = vmul.f32 %v2927_v39, %v2104_v28  ;;  %vm2112_vm2 = vweird.f32 %v2927_v39 }
 0x844   : > { %vm2113_vm1 = vmor %vm2111_vm0, %vm2112_vm2 }
 0x845   : > { %v2107_v42 = vmul.f32 %v2927_v39, %v2106_v40 }
 0x847   : > { %v2108_v43 = vmul.f32 0.5, %v2107_v42 }
 0x849   : > { %v2109_v44 = vsub.f32 1.5, %v2108_v43 }
 0x84b   : > { %v2110_v45 = vmul.f32 %v2927_v39, %v2109_v44 }
 0x84d   : > { %v2114_v47 = vsel %vm2113_vm1, %v2927_v39, %v2110_v45 }
 0x84e   : > { %v2115_v48 = vmul.f32 %v2114_v47, %v2085_v19 }
 0x850   : > { %v2119_v49 = vmul.f32 %v2924_v46, %v2115_v48 }
 0x852   : > { %v2120_v50 = vpack.c.bf16 %v2119_v49, %v2119_v49 }
 0x854   : > { %2661 = vmatmul.msk.bf16.vlgmr.msra.gmra.mxu0 %vm4117_vm6, %v2120_v50 }
 0x8d1   : > { %v2169_v53 = vpop.f32.mrf.mxu0 }
 0x8d2   : > { %v2170_v54 = vadd.f32 %v2925_v51, %v2169_v53 }
 0x8d4   : > { %2173 = vst [vmem:[#allocation14] sm:$0x3] %v2170_v54 }
 0x8d9   : > { %v2171_v55 = vpop.f32.mrf.mxu0 }
 0x8da PF: > { %p2763_p2 = scmp.eq.s32.totalorder %s3383_s11, 1  ;;  %s3182_s25 = smov [#allocation14]  }
 0x8db   : > { %s2188_s20 = sshll.u32 %s3182_s25, 4  ;;  %s4119_s17 = sld [smem:[#allocation35_spill]]  ;;  %s2189_s20 = int_to_ptr.vmem [resolvable:$true] %s2188_s20 }
 0x8e1   : > { %s2190_s16 = sshll.u32 %s4119_s17, 4  ;;  %s2191_s16 = int_to_ptr.hbm [resolvable:$true] %s2190_s16 }
 0x8e2   : > { %2742 = dma.vmem_to_hbm [thread:$0]  (%p2763_p2), %s2189_s20, 32, %s2191_s16, [#allocation7]  }
 0x8e3   : > { %3147 = dma.done.wait (%p2763_p2), [#allocation7], 32  }
 0x8e4   : > { %3149 = vsyncadd (%p2763_p2), [#allocation7], 4294967264 }
 0x8e5 PF: > { %s4120_s18 = sld [smem:[#allocation21_spill]]  ;;  %s4124_s27 = smov %s3156_s28 }
 0x8e6   : > { %s4121_s2 = sld [smem:[#allocation19_spill]]  ;;  %s4019_s30 = smov 0  }
 0x8e7   : > { %s4122_s29 = sld [smem:[#allocation22_spill]] }
 0x8e8   : > { %s4123_s0 = sld [smem:[#allocation20_spill]] }
 0x8eb   : > { %p34_p11 = scmp.ge.s32.totalorder %s4120_s18, 4  }
 0x8ec   : > { %s4125_s28 = smov %s4121_s2 }
 0x8ed   :  { %36 = sbr.rel (!%p34_p11) target bundleno = 30 (0x1e), region = 204 }
 0x8f2   :  { %2219 = vsyncpa [#allocation6], 1 }
 0x8f3   :  { %2221 = vsyncpa [#allocation6 + $0x1], 1 }
 0x8f4   :  { %2222 = vsyncpa [#allocation9], 1 }
 0x8f5   :  { %2224 = vsyncpa [#allocation9 + $0x1], 1 }
 0x8f6   :  { %2225 = vsyncpa [#allocation12], 1 }
 0x8f7   :  { %2227 = vsyncpa [#allocation12 + $0x1], 1 }
 0x8f8   :  { %2228 = vsyncpa [#allocation7], 1 }
 0x8f9   :  { %2230 = vsyncpa [#allocation7 + $0x1], 1 }

</bundles_post_ra>
